<compile_context>
chip_gen: v7x
topology: tpu7x:2x2x1
jax: 0.10.0
libtpu: 0.0.40
codegen_flags: <defaults>
</compile_context>

<pallas_src>
import functools

import numpy as np
import jax
import jax.numpy as jnp
from jax import lax
from jax.experimental import pallas as pl
from jax.experimental.pallas import tpu as pltpu


def _round_up(n, m):
    return ((n + m - 1) // m) * m


# ----------------------------------------------------------------------------
# in-kernel helper: im2col of a 'same' (padding == dilation) dilated 3x3 conv
# ----------------------------------------------------------------------------
def _im2col_3x3(xflat, dil, W, H):
    """(CP, H*W) -> (9*CP, H*W) tap matrix, tap order ky-major (matches the
    host-side weight packing).  Lane shifts use the XLU rotate when the
    operand is (8k, 128m)-aligned, otherwise a single-vreg zero-extended
    slice (the 8x8 / 4x4 planes)."""
    cp, hw = xflat.shape
    use_roll = (cp % 8 == 0) and (hw % 128 == 0)
    lw = int(round(np.log2(W)))
    idx = lax.broadcasted_iota(jnp.int32, (1, hw), 1)
    col = idx & (W - 1)
    row = idx >> lw
    if not use_roll:
        pad = dil * W + dil
        zeros = jnp.zeros((cp, pad), xflat.dtype)
        xpad = jnp.concatenate([zeros, xflat, zeros], axis=1)

    taps = []
    for ky in range(3):
        for kx in range(3):
            dy, dx = (ky - 1) * dil, (kx - 1) * dil
            off = dy * W + dx
            keep = None
            if dx > 0:
                keep = col < (W - dx)
            elif dx < 0:
                keep = col >= (-dx)
            if use_roll:
                patch = xflat if off == 0 else pltpu.roll(xflat, (-off) % hw, axis=1)
                # vertical boundary handled by an explicit row mask
                if dy > 0:
                    rk = row < (H - dy)
                    keep = rk if keep is None else jnp.logical_and(keep, rk)
                elif dy < 0:
                    rk = row >= (-dy)
                    keep = rk if keep is None else jnp.logical_and(keep, rk)
            else:
                # vertical boundary handled by the zero extension
                patch = xpad[:, pad + off:pad + off + hw]
            if keep is not None:
                patch = jnp.where(keep, patch, 0.0)
            taps.append(patch)
    return jnp.concatenate(taps, axis=0)


# ----------------------------------------------------------------------------
# fused kernel: full DilatedBranchConvSingle forward for one batch image
# ----------------------------------------------------------------------------
def _dbcb_kernel(x0_ref, x1_ref, x2_ref, x3_ref,
                 w_big_ref, w_small_ref, w_tiny_ref, b_conv_ref,
                 w_bn_ref, b_bn_ref,
                 sa_ref, ua_ref, sb_ref, ub_ref,
                 o_ref, *, Wa, Wb, Wc, identity):
    f32 = jnp.float32
    mm = functools.partial(jnp.dot, preferred_element_type=f32)
    relu = lambda v: jnp.maximum(v, 0.0)

    x0 = x0_ref[0].astype(f32)            # (CP, hwa)  fm[0]  16x16
    x1 = x1_ref[0].astype(f32)            # (CP, hwb)  fm[1]   8x8
    x2 = x2_ref[0].astype(f32)            # (CP, hwb)  fm[2]   8x8
    x3 = x3_ref[0].astype(f32)            # (CP, hwc)  fm[3]   4x4

    hwa, hwb, hwc = x0.shape[1], x1.shape[1], x3.shape[1]
    Ha, Hb, Hc = hwa // Wa, hwb // Wb, hwc // Wc

    # zero-upsample (even rows/cols) via host-precomputed 0/1 selection matmuls
    upA = mm(x1, ua_ref[...])             # (CP, hwa)   fm[1] -> 16x16 grid
    upB = mm(x3, ub_ref[...])             # (CP, hwb)   fm[3] ->  8x8 grid

    # ONE matmul per resolution (8 dilated convs -> 3 MXU pushes)
    rhs_big = jnp.concatenate([_im2col_3x3(x0, 4, Wa, Ha),      # b1_sr / b2_dr
                               _im2col_3x3(upA, 3, Wa, Ha)],    # b1_dr (T)
                              axis=0)                           # (18*CP, hwa)
    z_big = relu(mm(w_big_ref[...], rhs_big) + b_conv_ref[0])   # (R, hwa)

    rhs_small = jnp.concatenate([_im2col_3x3(x1, 3, Wb, Hb),    # b2_sr
                                 _im2col_3x3(x2, 2, Wb, Hb),    # b3_sr / b4_dr
                                 _im2col_3x3(upB, 1, Wb, Hb)],  # b3_dr (T)
                                axis=0)                         # (27*CP, hwb)
    z_small = relu(mm(w_small_ref[...], rhs_small) + b_conv_ref[1])  # (R, hwb)

    z_tiny = relu(mm(w_tiny_ref[...], _im2col_3x3(x3, 1, Wc, Hc))    # b4_sr
                  + b_conv_ref[2])                                   # (R, hwc)

    # stride-2 subsampling (bias/ReLU commute with the 0/1 column selection)
    zbig_sub = mm(z_big, sa_ref[...])       # (R, hwb)  holds h2_dr rows
    zsmall_sub = mm(z_small, sb_ref[...])   # (R, hwc)  holds h4_dr rows

    # 1x1 bottlenecks as zero-padded row-selecting matmuls (no channel concat,
    # no sublane-offset-4 slices), + ReLU + residual
    y1 = relu(mm(w_bn_ref[0], z_big) + b_bn_ref[0])                            # (OCP, hwa)
    y2 = relu(mm(w_bn_ref[1], z_small) + mm(w_bn_ref[2], zbig_sub) + b_bn_ref[1])
    y3 = relu(mm(w_bn_ref[3], z_small) + b_bn_ref[2])
    y4 = relu(mm(w_bn_ref[4], z_tiny) + mm(w_bn_ref[5], zsmall_sub) + b_bn_ref[3])
    if identity:
        y1 = y1 + x0
        y2 = y2 + x1
        y3 = y3 + x2
        y4 = y4 + x3

    # single lane-dense output slab: rows [:OCP] = h1 (full 256 lanes),
    # rows [OCP:] = [h2 | h3 | h4 | zero pad]
    pad = jnp.zeros((y1.shape[0], hwa - 2 * hwb - hwc), f32)
    packed = jnp.concatenate([y2, y3, y4, pad], axis=1)            # (OCP, hwa)
    o_ref[0] = jnp.concatenate([y1, packed], axis=0).astype(o_ref.dtype)


# ----------------------------------------------------------------------------
# host-side parameter packing (NumPy, matmul-ready, 8-aligned)
# ----------------------------------------------------------------------------
def _pack_params(p, C, CP, outc):
    oc = outc
    R = _round_up(4 * oc, 8)          # rows of z_big / z_small / z_tiny
    OCP = _round_up(oc, 8)            # rows of y1..y4
    TAP = 9 * CP                      # contraction block per conv group

    def conv_w_flat(w):               # Conv2d (O, I, 3, 3) -> (O, 9*CP)
        w = np.asarray(w, np.float32)
        out = np.zeros((w.shape[0], TAP), np.float32)
        for ky in range(3):
            for kx in range(3):
                t = ky * 3 + kx
                out[:, t * CP:t * CP + C] = w[:, :, ky, kx]
        return out

    def convT_w_flat(w):              # ConvTranspose2d (I, O, 3, 3) -> equivalent conv
        w = np.asarray(w, np.float32)
        w_eq = np.flip(w, axis=(2, 3)).transpose(1, 0, 2, 3)       # (O, I, 3, 3)
        return conv_w_flat(w_eq)

    b = lambda a: np.asarray(a, np.float32)

    # ---- stacked conv weights: one LHS per resolution -----------------------
    w_big = np.zeros((R, 2 * TAP), np.float32)
    b_big = np.zeros((R,), np.float32)
    w_big[0 * oc:1 * oc, 0:TAP] = conv_w_flat(p["b1_sr"][0]);   b_big[0 * oc:1 * oc] = b(p["b1_sr"][1])
    w_big[1 * oc:2 * oc, 0:TAP] = conv_w_flat(p["b2_dr"][0]);   b_big[1 * oc:2 * oc] = b(p["b2_dr"][1])
    w_big[2 * oc:3 * oc, TAP:2 * TAP] = convT_w_flat(p["b1_dr"][0]); b_big[2 * oc:3 * oc] = b(p["b1_dr"][1])

    w_small = np.zeros((R, 3 * TAP), np.float32)
    b_small = np.zeros((R,), np.float32)
    w_small[0 * oc:1 * oc, 0:TAP] = conv_w_flat(p["b2_sr"][0]);       b_small[0 * oc:1 * oc] = b(p["b2_sr"][1])
    w_small[1 * oc:2 * oc, TAP:2 * TAP] = conv_w_flat(p["b3_sr"][0]); b_small[1 * oc:2 * oc] = b(p["b3_sr"][1])
    w_small[2 * oc:3 * oc, TAP:2 * TAP] = conv_w_flat(p["b4_dr"][0]); b_small[2 * oc:3 * oc] = b(p["b4_dr"][1])
    w_small[3 * oc:4 * oc, 2 * TAP:3 * TAP] = convT_w_flat(p["b3_dr"][0]); b_small[3 * oc:4 * oc] = b(p["b3_dr"][1])

    w_tiny = np.zeros((R, TAP), np.float32)
    b_tiny = np.zeros((R,), np.float32)
    w_tiny[0:oc, :] = conv_w_flat(p["b4_sr"][0]);   b_tiny[0:oc] = b(p["b4_sr"][1])

    b_conv = np.stack([b_big, b_small, b_tiny]).reshape(3, R, 1)

    # ---- bottleneck weights, zero-padded so they select rows of z directly --
    def bn(name):
        w = np.asarray(p[name][0], np.float32)[:, :, 0, 0]    # (oc, 2*oc)
        return w[:, :oc], w[:, oc:], np.asarray(p[name][1], np.float32)

    wb1s, wb1d, bb1 = bn("b1_bn")
    wb2s, wb2d, bb2 = bn("b2_bn")
    wb3s, wb3d, bb3 = bn("b3_bn")
    wb4s, wb4d, bb4 = bn("b4_bn")

    w_bn = np.zeros((6, OCP, R), np.float32)
    w_bn[0, :oc, 0 * oc:1 * oc] = wb1s      # h1_sr = z_big[0:oc]
    w_bn[0, :oc, 2 * oc:3 * oc] = wb1d      # h1_dr = z_big[2oc:3oc]
    w_bn[1, :oc, 0 * oc:1 * oc] = wb2s      # h2_sr = z_small[0:oc]
    w_bn[2, :oc, 1 * oc:2 * oc] = wb2d      # h2_dr = (z_big @ S_a)[oc:2oc]
    w_bn[3, :oc, 1 * oc:2 * oc] = wb3s      # h3_sr = z_small[oc:2oc]
    w_bn[3, :oc, 3 * oc:4 * oc] = wb3d      # h3_dr = z_small[3oc:4oc]
    w_bn[4, :oc, 0 * oc:1 * oc] = wb4s      # h4_sr = z_tiny[0:oc]
    w_bn[5, :oc, 2 * oc:3 * oc] = wb4d      # h4_dr = (z_small @ S_b)[2oc:3oc]

    b_bn = np.zeros((4, OCP, 1), np.float32)
    b_bn[0, :oc, 0] = bb1
    b_bn[1, :oc, 0] = bb2
    b_bn[2, :oc, 0] = bb3
    b_bn[3, :oc, 0] = bb4

    return (jnp.asarray(w_big), jnp.asarray(w_small), jnp.asarray(w_tiny),
            jnp.asarray(b_conv), jnp.asarray(w_bn), jnp.asarray(b_bn))


def _resample_np(W_big, H_big):
    """0/1 matrices linking a flattened (H,W) grid and its (H/2,W/2) grid.
    S (HW, HW/4): even-row/even-col subsample via `x @ S`.
    U (HW/4, HW): zero-upsample to even positions via `x_small @ U` (U = S^T)."""
    W_s, H_s = W_big // 2, H_big // 2
    S = np.zeros((H_big * W_big, H_s * W_s), np.float32)
    for y in range(H_s):
        for x in range(W_s):
            S[(2 * y) * W_big + 2 * x, y * W_s + x] = 1.0
    return S, np.ascontiguousarray(S.T)


# ----------------------------------------------------------------------------
# host-side wrapper
# ----------------------------------------------------------------------------
def dbcb_forward(params, fm, identity):
    """DilatedBranchConvSingle forward.  fm: list of 4 NCHW float32 arrays."""
    N, C, Ha, Wa = fm[0].shape
    _, _, Hb, Wb = fm[1].shape
    _, _, Hc, Wc = fm[3].shape
    assert fm[2].shape == fm[1].shape, "fm[1] and fm[2] must share resolution"
    assert (Ha, Wa) == (2 * Hb, 2 * Wb) and (Hb, Wb) == (2 * Hc, 2 * Wc)
    for w in (Wa, Wb, Wc):
        assert w & (w - 1) == 0, "spatial width must be a power of two"
    outc = params["b1_sr"][0].shape[0]

    CP = _round_up(C, 8)
    OCP = _round_up(outc, 8)
    hwa, hwb, hwc = Ha * Wa, Hb * Wb, Hc * Wc

    def prep(x):                       # NCHW -> (N, CP, H*W), zero-pad channels
        x = x.astype(jnp.float32).reshape(N, C, -1)
        if CP > C:
            x = jnp.pad(x, ((0, 0), (0, CP - C), (0, 0)))
        return x

    x0, x1, x2, x3 = (prep(f) for f in fm)
    w_big, w_small, w_tiny, b_conv, w_bn, b_bn = _pack_params(params, C, CP, outc)
    S_a_np, U_a_np = _resample_np(Wa, Ha)     # 16x16 <-> 8x8
    S_b_np, U_b_np = _resample_np(Wb, Hb)     #  8x8  <-> 4x4
    S_a, U_a = jnp.asarray(S_a_np), jnp.asarray(U_a_np)
    S_b, U_b = jnp.asarray(S_b_np), jnp.asarray(U_b_np)

    kernel = functools.partial(_dbcb_kernel, Wa=Wa, Wb=Wb, Wc=Wc,
                               identity=identity)
    dt = jnp.float32
    const2 = lambda n: (0, 0)
    const3 = lambda n: (0, 0, 0)

    out = pl.pallas_call(
        kernel,
        out_shape=jax.ShapeDtypeStruct((N, 2 * OCP, hwa), dt),
        grid=(N,),
        in_specs=[
            pl.BlockSpec((1, CP, hwa), lambda n: (n, 0, 0)),
            pl.BlockSpec((1, CP, hwb), lambda n: (n, 0, 0)),
            pl.BlockSpec((1, CP, hwb), lambda n: (n, 0, 0)),
            pl.BlockSpec((1, CP, hwc), lambda n: (n, 0, 0)),
            pl.BlockSpec(w_big.shape, const2),
            pl.BlockSpec(w_small.shape, const2),
            pl.BlockSpec(w_tiny.shape, const2),
            pl.BlockSpec(b_conv.shape, const3),
            pl.BlockSpec(w_bn.shape, const3),
            pl.BlockSpec(b_bn.shape, const3),
            pl.BlockSpec(S_a.shape, const2),
            pl.BlockSpec(U_a.shape, const2),
            pl.BlockSpec(S_b.shape, const2),
            pl.BlockSpec(U_b.shape, const2),
        ],
        out_specs=pl.BlockSpec((1, 2 * OCP, hwa), lambda n: (n, 0, 0)),
        compiler_params=pltpu.CompilerParams(
            dimension_semantics=("parallel",)),
    )(x0, x1, x2, x3, w_big, w_small, w_tiny, b_conv, w_bn, b_bn,
      S_a, U_a, S_b, U_b)

    h1 = out[:, :outc, :].reshape(N, outc, Ha, Wa)
    h2 = out[:, OCP:OCP + outc, :hwb].reshape(N, outc, Hb, Wb)
    h3 = out[:, OCP:OCP + outc, hwb:2 * hwb].reshape(N, outc, Hb, Wb)
    h4 = out[:, OCP:OCP + outc, 2 * hwb:2 * hwb + hwc].reshape(N, outc, Hc, Wc)
    return [h1, h2, h3, h4]


# ----------------------------------------------------------------------------
# deterministic synthetic parameters (torch layouts)
# ----------------------------------------------------------------------------
def init_conv(key, kh, kw, cin, cout):
    k1, k2 = jax.random.split(key)
    bound = 1.0 / np.sqrt(cin * kh * kw)
    w = jax.random.uniform(k1, (cout, cin, kh, kw), jnp.float32, -bound, bound)
    b = jax.random.uniform(k2, (cout,), jnp.float32, -bound, bound)
    return w, b


def init_convT(key, kh, kw, cin, cout):
    k1, k2 = jax.random.split(key)
    bound = 1.0 / np.sqrt(cout * kh * kw)
    w = jax.random.uniform(k1, (cin, cout, kh, kw), jnp.float32, -bound, bound)
    b = jax.random.uniform(k2, (cout,), jnp.float32, -bound, bound)
    return w, b


# ----------------------------------------------------------------------------
# pure-JAX reference (lax.conv_general_dilated) for correctness check
# ----------------------------------------------------------------------------
def _ref_conv(x, w, b, stride, padding, dilation):
    y = lax.conv_general_dilated(
        x, w, (stride, stride), [(padding, padding)] * 2,
        rhs_dilation=(dilation, dilation),
        dimension_numbers=("NCHW", "OIHW", "NCHW"),
        precision=lax.Precision.HIGHEST)
    return jax.nn.relu(y + b.reshape(1, -1, 1, 1))


def _ref_convT(x, wt, b, stride, padding, dilation, output_padding):
    k = wt.shape[2]
    w_eq = jnp.transpose(jnp.flip(wt, (2, 3)), (1, 0, 2, 3))  # (O, I, kh, kw)
    pad_eq = dilation * (k - 1) - padding
    y = lax.conv_general_dilated(
        x, w_eq, (1, 1), [(pad_eq, pad_eq + output_padding)] * 2,
        lhs_dilation=(stride, stride), rhs_dilation=(dilation, dilation),
        dimension_numbers=("NCHW", "OIHW", "NCHW"),
        precision=lax.Precision.HIGHEST)
    return jax.nn.relu(y + b.reshape(1, -1, 1, 1))


def dbcb_forward_ref(p, fm, identity):
    h1_sr = _ref_conv(fm[0], *p["b1_sr"], 1, 4, 4)
    h1_dr = _ref_convT(fm[1], *p["b1_dr"], 2, 3, 3, 1)
    h2_sr = _ref_conv(fm[1], *p["b2_sr"], 1, 3, 3)
    h2_dr = _ref_conv(fm[0], *p["b2_dr"], 2, 4, 4)
    h3_sr = _ref_conv(fm[2], *p["b3_sr"], 1, 2, 2)
    h3_dr = _ref_convT(fm[3], *p["b3_dr"], 2, 1, 1, 1)
    h4_sr = _ref_conv(fm[3], *p["b4_sr"], 1, 1, 1)
    h4_dr = _ref_conv(fm[2], *p["b4_dr"], 2, 2, 2)
    h1 = _ref_conv(jnp.concatenate([h1_sr, h1_dr], 1), *p["b1_bn"], 1, 0, 1)
    h2 = _ref_conv(jnp.concatenate([h2_sr, h2_dr], 1), *p["b2_bn"], 1, 0, 1)
    h3 = _ref_conv(jnp.concatenate([h3_sr, h3_dr], 1), *p["b3_bn"], 1, 0, 1)
    h4 = _ref_conv(jnp.concatenate([h4_sr, h4_dr], 1), *p["b4_bn"], 1, 0, 1)
    if identity:
        h1, h2, h3, h4 = h1 + fm[0], h2 + fm[1], h3 + fm[2], h4 + fm[3]
    return [h1, h2, h3, h4]


# ----------------------------------------------------------------------------
if __name__ == "__main__":
    inc = outc = 4            # identity branch active (inc == outc)
    N = 2
    key = jax.random.PRNGKey(0)
    keys = jax.random.split(key, 16)

    params = {
        "b1_sr": init_conv(keys[0], 3, 3, inc, outc),
        "b1_dr": init_convT(keys[1], 3, 3, inc, outc),
        "b2_sr": init_conv(keys[2], 3, 3, inc, outc),
        "b2_dr": init_conv(keys[3], 3, 3, inc, outc),
        "b3_sr": init_conv(keys[4], 3, 3, inc, outc),
        "b3_dr": init_convT(keys[5], 3, 3, inc, outc),
        "b4_sr": init_conv(keys[6], 3, 3, inc, outc),
        "b4_dr": init_conv(keys[7], 3, 3, inc, outc),
        "b1_bn": init_conv(keys[8], 1, 1, 2 * outc, outc),
        "b2_bn": init_conv(keys[9], 1, 1, 2 * outc, outc),
        "b3_bn": init_conv(keys[10], 1, 1, 2 * outc, outc),
        "b4_bn": init_conv(keys[11], 1, 1, 2 * outc, outc),
    }

    # feature pyramid (NCHW, like the PyTorch module): fm1 = fm0/2, fm3 = fm2/2
    fm = [
        jax.random.normal(keys[12], (N, inc, 16, 16), jnp.float32),
        jax.random.normal(keys[13], (N, inc, 8, 8), jnp.float32),
        jax.random.normal(keys[14], (N, inc, 8, 8), jnp.float32),
        jax.random.normal(keys[15], (N, inc, 4, 4), jnp.float32),
    ]
    identity = inc == outc

    outs = jax.block_until_ready(dbcb_forward(params, fm, identity))
    refs = jax.block_until_ready(dbcb_forward_ref(params, fm, identity))

    for o, r in zip(outs, refs):
        assert o.shape == r.shape, (o.shape, r.shape)
        np.testing.assert_allclose(np.asarray(o), np.asarray(r),
                                   rtol=5e-4, atol=5e-5)

    print("KERNEL_OK")
</pallas_src>

<mosaic_0001>
module attributes {stable_mosaic.version = 11 : i64} {
  func.func @_dbcb_kernel(%arg0: i32, %arg1: memref<1x8x256xf32, #tpu.memory_space<vmem>>, %arg2: memref<1x8x64xf32, #tpu.memory_space<vmem>>, %arg3: memref<1x8x64xf32, #tpu.memory_space<vmem>>, %arg4: memref<1x8x16xf32, #tpu.memory_space<vmem>>, %arg5: memref<16x144xf32, #tpu.memory_space<vmem>>, %arg6: memref<16x216xf32, #tpu.memory_space<vmem>>, %arg7: memref<16x72xf32, #tpu.memory_space<vmem>>, %arg8: memref<3x16x1xf32, #tpu.memory_space<vmem>>, %arg9: memref<6x8x16xf32, #tpu.memory_space<vmem>>, %arg10: memref<4x8x1xf32, #tpu.memory_space<vmem>>, %arg11: memref<256x64xf32, #tpu.memory_space<vmem>>, %arg12: memref<64x256xf32, #tpu.memory_space<vmem>>, %arg13: memref<64x16xf32, #tpu.memory_space<vmem>>, %arg14: memref<16x64xf32, #tpu.memory_space<vmem>>, %arg15: memref<1x16x256xf32, #tpu.memory_space<vmem>>) attributes {dimension_semantics = [#tpu.dimension_semantics<parallel>], iteration_bounds = array<i64: 2>, scalar_prefetch = 0 : i64, scratch_operands = 0 : i64, tpu.core_type = #tpu.core_type<tc>, window_params = [{transform_indices = @transform_0, window_bounds = array<i64: 1, 8, 256>}, {transform_indices = @transform_1, window_bounds = array<i64: 1, 8, 64>}, {transform_indices = @transform_2, window_bounds = array<i64: 1, 8, 64>}, {transform_indices = @transform_3, window_bounds = array<i64: 1, 8, 16>}, {pipeline_mode = #tpu.pipeline_mode<synchronous>, transform_indices = @transform_4, window_bounds = array<i64: 16, 144>}, {pipeline_mode = #tpu.pipeline_mode<synchronous>, transform_indices = @transform_5, window_bounds = array<i64: 16, 216>}, {pipeline_mode = #tpu.pipeline_mode<synchronous>, transform_indices = @transform_6, window_bounds = array<i64: 16, 72>}, {pipeline_mode = #tpu.pipeline_mode<synchronous>, transform_indices = @transform_7, window_bounds = array<i64: 3, 16, 1>}, {pipeline_mode = #tpu.pipeline_mode<synchronous>, transform_indices = @transform_8, window_bounds = array<i64: 6, 8, 16>}, {pipeline_mode = #tpu.pipeline_mode<synchronous>, transform_indices = @transform_9, window_bounds = array<i64: 4, 8, 1>}, {pipeline_mode = #tpu.pipeline_mode<synchronous>, transform_indices = @transform_10, window_bounds = array<i64: 256, 64>}, {pipeline_mode = #tpu.pipeline_mode<synchronous>, transform_indices = @transform_11, window_bounds = array<i64: 64, 256>}, {pipeline_mode = #tpu.pipeline_mode<synchronous>, transform_indices = @transform_12, window_bounds = array<i64: 64, 16>}, {pipeline_mode = #tpu.pipeline_mode<synchronous>, transform_indices = @transform_13, window_bounds = array<i64: 16, 64>}, {transform_indices = @transform_14, window_bounds = array<i64: 1, 16, 256>}]} {
    %c0 = arith.constant 0 : index
    %c0_0 = arith.constant 0 : index
    %c0_1 = arith.constant 0 : index
    %0 = vector.load %arg1[%c0, %c0_0, %c0_1] : memref<1x8x256xf32, #tpu.memory_space<vmem>>, vector<1x8x256xf32>
    %1 = vector.shape_cast %0 : vector<1x8x256xf32> to vector<8x256xf32>
    %c0_2 = arith.constant 0 : index
    %c0_3 = arith.constant 0 : index
    %c0_4 = arith.constant 0 : index
    %2 = vector.load %arg2[%c0_2, %c0_3, %c0_4] : memref<1x8x64xf32, #tpu.memory_space<vmem>>, vector<1x8x64xf32>
    %3 = vector.shape_cast %2 : vector<1x8x64xf32> to vector<8x64xf32>
    %c0_5 = arith.constant 0 : index
    %c0_6 = arith.constant 0 : index
    %c0_7 = arith.constant 0 : index
    %4 = vector.load %arg3[%c0_5, %c0_6, %c0_7] : memref<1x8x64xf32, #tpu.memory_space<vmem>>, vector<1x8x64xf32>
    %5 = vector.shape_cast %4 : vector<1x8x64xf32> to vector<8x64xf32>
    %c0_8 = arith.constant 0 : index
    %c0_9 = arith.constant 0 : index
    %c0_10 = arith.constant 0 : index
    %6 = vector.load %arg4[%c0_8, %c0_9, %c0_10] : memref<1x8x16xf32, #tpu.memory_space<vmem>>, vector<1x8x16xf32>
    %7 = vector.shape_cast %6 : vector<1x8x16xf32> to vector<8x16xf32>
    %c0_11 = arith.constant 0 : index
    %c0_12 = arith.constant 0 : index
    %8 = vector.load %arg12[%c0_11, %c0_12] : memref<64x256xf32, #tpu.memory_space<vmem>>, vector<64x256xf32>
    %cst = arith.constant dense<0.000000e+00> : vector<8x256xf32>
    %9 = tpu.matmul %3, %8, %cst {dimension_numbers = #tpu.dot_dimension_numbers<[1], [0], [0], [1], [0, 0, 1, 1], [], []>} : vector<8x64xf32>, vector<64x256xf32>, vector<8x256xf32> -> vector<8x256xf32>
    %c0_13 = arith.constant 0 : index
    %c0_14 = arith.constant 0 : index
    %10 = vector.load %arg14[%c0_13, %c0_14] : memref<16x64xf32, #tpu.memory_space<vmem>>, vector<16x64xf32>
    %cst_15 = arith.constant dense<0.000000e+00> : vector<8x64xf32>
    %11 = tpu.matmul %7, %10, %cst_15 {dimension_numbers = #tpu.dot_dimension_numbers<[1], [0], [0], [1], [0, 0, 1, 1], [], []>} : vector<8x16xf32>, vector<16x64xf32>, vector<8x64xf32> -> vector<8x64xf32>
    %12 = tpu.iota {dimensions = array<i32: 1>} : vector<1x256xi32>
    %c15_i32 = arith.constant 15 : i32
    %13 = vector.broadcast %c15_i32 : i32 to vector<1x256xi32>
    %14 = arith.andi %12, %13 : vector<1x256xi32>
    %c4_i32 = arith.constant 4 : i32
    %15 = vector.broadcast %c4_i32 : i32 to vector<1x256xi32>
    %16 = arith.shrsi %12, %15 : vector<1x256xi32>
    %c4_i32_16 = arith.constant 4 : i32
    %17 = vector.broadcast %c4_i32_16 : i32 to vector<1x256xi32>
    %18 = arith.cmpi sge, %14, %17 : vector<1x256xi32>
    %c68_i32 = arith.constant 68 : i32
    %19 = tpu.dynamic_rotate %1 by %c68_i32 dim 1 : vector<8x256xf32>, i32 -> vector<8x256xf32>
    %c4_i32_17 = arith.constant 4 : i32
    %20 = vector.broadcast %c4_i32_17 : i32 to vector<1x256xi32>
    %21 = arith.cmpi sge, %16, %20 : vector<1x256xi32>
    %22 = arith.andi %18, %21 : vector<1x256xi1>
    %cst_18 = arith.constant 0.000000e+00 : f32
    %23 = vector.shape_cast %22 : vector<1x256xi1> to vector<1x256xi1>
    %24 = vector.broadcast %23 : vector<1x256xi1> to vector<8x256xi1>
    %25 = vector.broadcast %cst_18 : f32 to vector<8x256xf32>
    %26 = arith.select %24, %19, %25 : vector<8x256xi1>, vector<8x256xf32>
    %c64_i32 = arith.constant 64 : i32
    %27 = tpu.dynamic_rotate %1 by %c64_i32 dim 1 : vector<8x256xf32>, i32 -> vector<8x256xf32>
    %c4_i32_19 = arith.constant 4 : i32
    %28 = vector.broadcast %c4_i32_19 : i32 to vector<1x256xi32>
    %29 = arith.cmpi sge, %16, %28 : vector<1x256xi32>
    %cst_20 = arith.constant 0.000000e+00 : f32
    %30 = vector.shape_cast %29 : vector<1x256xi1> to vector<1x256xi1>
    %31 = vector.broadcast %30 : vector<1x256xi1> to vector<8x256xi1>
    %32 = vector.broadcast %cst_20 : f32 to vector<8x256xf32>
    %33 = arith.select %31, %27, %32 : vector<8x256xi1>, vector<8x256xf32>
    %c12_i32 = arith.constant 12 : i32
    %34 = vector.broadcast %c12_i32 : i32 to vector<1x256xi32>
    %35 = arith.cmpi slt, %14, %34 : vector<1x256xi32>
    %c60_i32 = arith.constant 60 : i32
    %36 = tpu.dynamic_rotate %1 by %c60_i32 dim 1 : vector<8x256xf32>, i32 -> vector<8x256xf32>
    %c4_i32_21 = arith.constant 4 : i32
    %37 = vector.broadcast %c4_i32_21 : i32 to vector<1x256xi32>
    %38 = arith.cmpi sge, %16, %37 : vector<1x256xi32>
    %39 = arith.andi %35, %38 : vector<1x256xi1>
    %cst_22 = arith.constant 0.000000e+00 : f32
    %40 = vector.shape_cast %39 : vector<1x256xi1> to vector<1x256xi1>
    %41 = vector.broadcast %40 : vector<1x256xi1> to vector<8x256xi1>
    %42 = vector.broadcast %cst_22 : f32 to vector<8x256xf32>
    %43 = arith.select %41, %36, %42 : vector<8x256xi1>, vector<8x256xf32>
    %c4_i32_23 = arith.constant 4 : i32
    %44 = vector.broadcast %c4_i32_23 : i32 to vector<1x256xi32>
    %45 = arith.cmpi sge, %14, %44 : vector<1x256xi32>
    %c4_i32_24 = arith.constant 4 : i32
    %46 = tpu.dynamic_rotate %1 by %c4_i32_24 dim 1 : vector<8x256xf32>, i32 -> vector<8x256xf32>
    %cst_25 = arith.constant 0.000000e+00 : f32
    %47 = vector.shape_cast %45 : vector<1x256xi1> to vector<1x256xi1>
    %48 = vector.broadcast %47 : vector<1x256xi1> to vector<8x256xi1>
    %49 = vector.broadcast %cst_25 : f32 to vector<8x256xf32>
    %50 = arith.select %48, %46, %49 : vector<8x256xi1>, vector<8x256xf32>
    %c12_i32_26 = arith.constant 12 : i32
    %51 = vector.broadcast %c12_i32_26 : i32 to vector<1x256xi32>
    %52 = arith.cmpi slt, %14, %51 : vector<1x256xi32>
    %c252_i32 = arith.constant 252 : i32
    %53 = tpu.dynamic_rotate %1 by %c252_i32 dim 1 : vector<8x256xf32>, i32 -> vector<8x256xf32>
    %cst_27 = arith.constant 0.000000e+00 : f32
    %54 = vector.shape_cast %52 : vector<1x256xi1> to vector<1x256xi1>
    %55 = vector.broadcast %54 : vector<1x256xi1> to vector<8x256xi1>
    %56 = vector.broadcast %cst_27 : f32 to vector<8x256xf32>
    %57 = arith.select %55, %53, %56 : vector<8x256xi1>, vector<8x256xf32>
    %c4_i32_28 = arith.constant 4 : i32
    %58 = vector.broadcast %c4_i32_28 : i32 to vector<1x256xi32>
    %59 = arith.cmpi sge, %14, %58 : vector<1x256xi32>
    %c196_i32 = arith.constant 196 : i32
    %60 = tpu.dynamic_rotate %1 by %c196_i32 dim 1 : vector<8x256xf32>, i32 -> vector<8x256xf32>
    %c12_i32_29 = arith.constant 12 : i32
    %61 = vector.broadcast %c12_i32_29 : i32 to vector<1x256xi32>
    %62 = arith.cmpi slt, %16, %61 : vector<1x256xi32>
    %63 = arith.andi %59, %62 : vector<1x256xi1>
    %cst_30 = arith.constant 0.000000e+00 : f32
    %64 = vector.shape_cast %63 : vector<1x256xi1> to vector<1x256xi1>
    %65 = vector.broadcast %64 : vector<1x256xi1> to vector<8x256xi1>
    %66 = vector.broadcast %cst_30 : f32 to vector<8x256xf32>
    %67 = arith.select %65, %60, %66 : vector<8x256xi1>, vector<8x256xf32>
    %c192_i32 = arith.constant 192 : i32
    %68 = tpu.dynamic_rotate %1 by %c192_i32 dim 1 : vector<8x256xf32>, i32 -> vector<8x256xf32>
    %c12_i32_31 = arith.constant 12 : i32
    %69 = vector.broadcast %c12_i32_31 : i32 to vector<1x256xi32>
    %70 = arith.cmpi slt, %16, %69 : vector<1x256xi32>
    %cst_32 = arith.constant 0.000000e+00 : f32
    %71 = vector.shape_cast %70 : vector<1x256xi1> to vector<1x256xi1>
    %72 = vector.broadcast %71 : vector<1x256xi1> to vector<8x256xi1>
    %73 = vector.broadcast %cst_32 : f32 to vector<8x256xf32>
    %74 = arith.select %72, %68, %73 : vector<8x256xi1>, vector<8x256xf32>
    %c12_i32_33 = arith.constant 12 : i32
    %75 = vector.broadcast %c12_i32_33 : i32 to vector<1x256xi32>
    %76 = arith.cmpi slt, %14, %75 : vector<1x256xi32>
    %c188_i32 = arith.constant 188 : i32
    %77 = tpu.dynamic_rotate %1 by %c188_i32 dim 1 : vector<8x256xf32>, i32 -> vector<8x256xf32>
    %c12_i32_34 = arith.constant 12 : i32
    %78 = vector.broadcast %c12_i32_34 : i32 to vector<1x256xi32>
    %79 = arith.cmpi slt, %16, %78 : vector<1x256xi32>
    %80 = arith.andi %76, %79 : vector<1x256xi1>
    %cst_35 = arith.constant 0.000000e+00 : f32
    %81 = vector.shape_cast %80 : vector<1x256xi1> to vector<1x256xi1>
    %82 = vector.broadcast %81 : vector<1x256xi1> to vector<8x256xi1>
    %83 = vector.broadcast %cst_35 : f32 to vector<8x256xf32>
    %84 = arith.select %82, %77, %83 : vector<8x256xi1>, vector<8x256xf32>
    %85 = tpu.concatenate %26, %33, %43, %50, %1, %57, %67, %74, %84 in 0 : vector<8x256xf32>, vector<8x256xf32>, vector<8x256xf32>, vector<8x256xf32>, vector<8x256xf32>, vector<8x256xf32>, vector<8x256xf32>, vector<8x256xf32>, vector<8x256xf32> -> vector<72x256xf32>
    %86 = tpu.iota {dimensions = array<i32: 1>} : vector<1x256xi32>
    %c15_i32_36 = arith.constant 15 : i32
    %87 = vector.broadcast %c15_i32_36 : i32 to vector<1x256xi32>
    %88 = arith.andi %86, %87 : vector<1x256xi32>
    %c4_i32_37 = arith.constant 4 : i32
    %89 = vector.broadcast %c4_i32_37 : i32 to vector<1x256xi32>
    %90 = arith.shrsi %86, %89 : vector<1x256xi32>
    %c3_i32 = arith.constant 3 : i32
    %91 = vector.broadcast %c3_i32 : i32 to vector<1x256xi32>
    %92 = arith.cmpi sge, %88, %91 : vector<1x256xi32>
    %c51_i32 = arith.constant 51 : i32
    %93 = tpu.dynamic_rotate %9 by %c51_i32 dim 1 : vector<8x256xf32>, i32 -> vector<8x256xf32>
    %c3_i32_38 = arith.constant 3 : i32
    %94 = vector.broadcast %c3_i32_38 : i32 to vector<1x256xi32>
    %95 = arith.cmpi sge, %90, %94 : vector<1x256xi32>
    %96 = arith.andi %92, %95 : vector<1x256xi1>
    %cst_39 = arith.constant 0.000000e+00 : f32
    %97 = vector.shape_cast %96 : vector<1x256xi1> to vector<1x256xi1>
    %98 = vector.broadcast %97 : vector<1x256xi1> to vector<8x256xi1>
    %99 = vector.broadcast %cst_39 : f32 to vector<8x256xf32>
    %100 = arith.select %98, %93, %99 : vector<8x256xi1>, vector<8x256xf32>
    %c48_i32 = arith.constant 48 : i32
    %101 = tpu.dynamic_rotate %9 by %c48_i32 dim 1 : vector<8x256xf32>, i32 -> vector<8x256xf32>
    %c3_i32_40 = arith.constant 3 : i32
    %102 = vector.broadcast %c3_i32_40 : i32 to vector<1x256xi32>
    %103 = arith.cmpi sge, %90, %102 : vector<1x256xi32>
    %cst_41 = arith.constant 0.000000e+00 : f32
    %104 = vector.shape_cast %103 : vector<1x256xi1> to vector<1x256xi1>
    %105 = vector.broadcast %104 : vector<1x256xi1> to vector<8x256xi1>
    %106 = vector.broadcast %cst_41 : f32 to vector<8x256xf32>
    %107 = arith.select %105, %101, %106 : vector<8x256xi1>, vector<8x256xf32>
    %c13_i32 = arith.constant 13 : i32
    %108 = vector.broadcast %c13_i32 : i32 to vector<1x256xi32>
    %109 = arith.cmpi slt, %88, %108 : vector<1x256xi32>
    %c45_i32 = arith.constant 45 : i32
    %110 = tpu.dynamic_rotate %9 by %c45_i32 dim 1 : vector<8x256xf32>, i32 -> vector<8x256xf32>
    %c3_i32_42 = arith.constant 3 : i32
    %111 = vector.broadcast %c3_i32_42 : i32 to vector<1x256xi32>
    %112 = arith.cmpi sge, %90, %111 : vector<1x256xi32>
    %113 = arith.andi %109, %112 : vector<1x256xi1>
    %cst_43 = arith.constant 0.000000e+00 : f32
    %114 = vector.shape_cast %113 : vector<1x256xi1> to vector<1x256xi1>
    %115 = vector.broadcast %114 : vector<1x256xi1> to vector<8x256xi1>
    %116 = vector.broadcast %cst_43 : f32 to vector<8x256xf32>
    %117 = arith.select %115, %110, %116 : vector<8x256xi1>, vector<8x256xf32>
    %c3_i32_44 = arith.constant 3 : i32
    %118 = vector.broadcast %c3_i32_44 : i32 to vector<1x256xi32>
    %119 = arith.cmpi sge, %88, %118 : vector<1x256xi32>
    %c3_i32_45 = arith.constant 3 : i32
    %120 = tpu.dynamic_rotate %9 by %c3_i32_45 dim 1 : vector<8x256xf32>, i32 -> vector<8x256xf32>
    %cst_46 = arith.constant 0.000000e+00 : f32
    %121 = vector.shape_cast %119 : vector<1x256xi1> to vector<1x256xi1>
    %122 = vector.broadcast %121 : vector<1x256xi1> to vector<8x256xi1>
    %123 = vector.broadcast %cst_46 : f32 to vector<8x256xf32>
    %124 = arith.select %122, %120, %123 : vector<8x256xi1>, vector<8x256xf32>
    %c13_i32_47 = arith.constant 13 : i32
    %125 = vector.broadcast %c13_i32_47 : i32 to vector<1x256xi32>
    %126 = arith.cmpi slt, %88, %125 : vector<1x256xi32>
    %c253_i32 = arith.constant 253 : i32
    %127 = tpu.dynamic_rotate %9 by %c253_i32 dim 1 : vector<8x256xf32>, i32 -> vector<8x256xf32>
    %cst_48 = arith.constant 0.000000e+00 : f32
    %128 = vector.shape_cast %126 : vector<1x256xi1> to vector<1x256xi1>
    %129 = vector.broadcast %128 : vector<1x256xi1> to vector<8x256xi1>
    %130 = vector.broadcast %cst_48 : f32 to vector<8x256xf32>
    %131 = arith.select %129, %127, %130 : vector<8x256xi1>, vector<8x256xf32>
    %c3_i32_49 = arith.constant 3 : i32
    %132 = vector.broadcast %c3_i32_49 : i32 to vector<1x256xi32>
    %133 = arith.cmpi sge, %88, %132 : vector<1x256xi32>
    %c211_i32 = arith.constant 211 : i32
    %134 = tpu.dynamic_rotate %9 by %c211_i32 dim 1 : vector<8x256xf32>, i32 -> vector<8x256xf32>
    %c13_i32_50 = arith.constant 13 : i32
    %135 = vector.broadcast %c13_i32_50 : i32 to vector<1x256xi32>
    %136 = arith.cmpi slt, %90, %135 : vector<1x256xi32>
    %137 = arith.andi %133, %136 : vector<1x256xi1>
    %cst_51 = arith.constant 0.000000e+00 : f32
    %138 = vector.shape_cast %137 : vector<1x256xi1> to vector<1x256xi1>
    %139 = vector.broadcast %138 : vector<1x256xi1> to vector<8x256xi1>
    %140 = vector.broadcast %cst_51 : f32 to vector<8x256xf32>
    %141 = arith.select %139, %134, %140 : vector<8x256xi1>, vector<8x256xf32>
    %c208_i32 = arith.constant 208 : i32
    %142 = tpu.dynamic_rotate %9 by %c208_i32 dim 1 : vector<8x256xf32>, i32 -> vector<8x256xf32>
    %c13_i32_52 = arith.constant 13 : i32
    %143 = vector.broadcast %c13_i32_52 : i32 to vector<1x256xi32>
    %144 = arith.cmpi slt, %90, %143 : vector<1x256xi32>
    %cst_53 = arith.constant 0.000000e+00 : f32
    %145 = vector.shape_cast %144 : vector<1x256xi1> to vector<1x256xi1>
    %146 = vector.broadcast %145 : vector<1x256xi1> to vector<8x256xi1>
    %147 = vector.broadcast %cst_53 : f32 to vector<8x256xf32>
    %148 = arith.select %146, %142, %147 : vector<8x256xi1>, vector<8x256xf32>
    %c13_i32_54 = arith.constant 13 : i32
    %149 = vector.broadcast %c13_i32_54 : i32 to vector<1x256xi32>
    %150 = arith.cmpi slt, %88, %149 : vector<1x256xi32>
    %c205_i32 = arith.constant 205 : i32
    %151 = tpu.dynamic_rotate %9 by %c205_i32 dim 1 : vector<8x256xf32>, i32 -> vector<8x256xf32>
    %c13_i32_55 = arith.constant 13 : i32
    %152 = vector.broadcast %c13_i32_55 : i32 to vector<1x256xi32>
    %153 = arith.cmpi slt, %90, %152 : vector<1x256xi32>
    %154 = arith.andi %150, %153 : vector<1x256xi1>
    %cst_56 = arith.constant 0.000000e+00 : f32
    %155 = vector.shape_cast %154 : vector<1x256xi1> to vector<1x256xi1>
    %156 = vector.broadcast %155 : vector<1x256xi1> to vector<8x256xi1>
    %157 = vector.broadcast %cst_56 : f32 to vector<8x256xf32>
    %158 = arith.select %156, %151, %157 : vector<8x256xi1>, vector<8x256xf32>
    %159 = tpu.concatenate %100, %107, %117, %124, %9, %131, %141, %148, %158 in 0 : vector<8x256xf32>, vector<8x256xf32>, vector<8x256xf32>, vector<8x256xf32>, vector<8x256xf32>, vector<8x256xf32>, vector<8x256xf32>, vector<8x256xf32>, vector<8x256xf32> -> vector<72x256xf32>
    %160 = tpu.concatenate %85, %159 in 0 : vector<72x256xf32>, vector<72x256xf32> -> vector<144x256xf32>
    %c0_57 = arith.constant 0 : index
    %c0_58 = arith.constant 0 : index
    %161 = vector.load %arg5[%c0_57, %c0_58] : memref<16x144xf32, #tpu.memory_space<vmem>>, vector<16x144xf32>
    %cst_59 = arith.constant dense<0.000000e+00> : vector<16x256xf32>
    %162 = tpu.matmul %161, %160, %cst_59 {dimension_numbers = #tpu.dot_dimension_numbers<[1], [0], [0], [1], [0, 0, 1, 1], [], []>} : vector<16x144xf32>, vector<144x256xf32>, vector<16x256xf32> -> vector<16x256xf32>
    %c0_60 = arith.constant 0 : index
    %c0_61 = arith.constant 0 : index
    %c0_62 = arith.constant 0 : index
    %163 = vector.load %arg8[%c0_60, %c0_61, %c0_62] : memref<3x16x1xf32, #tpu.memory_space<vmem>>, vector<1x16x1xf32>
    %164 = vector.shape_cast %163 : vector<1x16x1xf32> to vector<16x1xf32>
    %165 = vector.broadcast %164 : vector<16x1xf32> to vector<16x256xf32>
    %166 = arith.addf %162, %165 : vector<16x256xf32>
    %cst_63 = arith.constant 0.000000e+00 : f32
    %167 = vector.broadcast %cst_63 : f32 to vector<16x256xf32>
    %168 = arith.maximumf %166, %167 : vector<16x256xf32>
    %169 = tpu.iota {dimensions = array<i32: 1>} : vector<1x64xi32>
    %c7_i32 = arith.constant 7 : i32
    %170 = vector.broadcast %c7_i32 : i32 to vector<1x64xi32>
    %171 = arith.andi %169, %170 : vector<1x64xi32>
    %cst_64 = arith.constant 0.000000e+00 : f32
    %172 = vector.broadcast %cst_64 : f32 to vector<8x27xf32>
    %173 = tpu.concatenate %172, %3, %172 in 1 : vector<8x27xf32>, vector<8x64xf32>, vector<8x27xf32> -> vector<8x118xf32>
    %c3_i32_65 = arith.constant 3 : i32
    %174 = vector.broadcast %c3_i32_65 : i32 to vector<1x64xi32>
    %175 = arith.cmpi sge, %171, %174 : vector<1x64xi32>
    %176 = vector.extract_strided_slice %173 {offsets = [0, 0], sizes = [8, 64], strides = [1, 1]} : vector<8x118xf32> to vector<8x64xf32>
    %cst_66 = arith.constant 0.000000e+00 : f32
    %177 = vector.shape_cast %175 : vector<1x64xi1> to vector<1x64xi1>
    %178 = vector.broadcast %177 : vector<1x64xi1> to vector<8x64xi1>
    %179 = vector.broadcast %cst_66 : f32 to vector<8x64xf32>
    %180 = arith.select %178, %176, %179 : vector<8x64xi1>, vector<8x64xf32>
    %181 = vector.extract_strided_slice %173 {offsets = [0, 3], sizes = [8, 64], strides = [1, 1]} : vector<8x118xf32> to vector<8x64xf32>
    %c5_i32 = arith.constant 5 : i32
    %182 = vector.broadcast %c5_i32 : i32 to vector<1x64xi32>
    %183 = arith.cmpi slt, %171, %182 : vector<1x64xi32>
    %184 = vector.extract_strided_slice %173 {offsets = [0, 6], sizes = [8, 64], strides = [1, 1]} : vector<8x118xf32> to vector<8x64xf32>
    %cst_67 = arith.constant 0.000000e+00 : f32
    %185 = vector.shape_cast %183 : vector<1x64xi1> to vector<1x64xi1>
    %186 = vector.broadcast %185 : vector<1x64xi1> to vector<8x64xi1>
    %187 = vector.broadcast %cst_67 : f32 to vector<8x64xf32>
    %188 = arith.select %186, %184, %187 : vector<8x64xi1>, vector<8x64xf32>
    %c3_i32_68 = arith.constant 3 : i32
    %189 = vector.broadcast %c3_i32_68 : i32 to vector<1x64xi32>
    %190 = arith.cmpi sge, %171, %189 : vector<1x64xi32>
    %191 = vector.extract_strided_slice %173 {offsets = [0, 24], sizes = [8, 64], strides = [1, 1]} : vector<8x118xf32> to vector<8x64xf32>
    %cst_69 = arith.constant 0.000000e+00 : f32
    %192 = vector.shape_cast %190 : vector<1x64xi1> to vector<1x64xi1>
    %193 = vector.broadcast %192 : vector<1x64xi1> to vector<8x64xi1>
    %194 = vector.broadcast %cst_69 : f32 to vector<8x64xf32>
    %195 = arith.select %193, %191, %194 : vector<8x64xi1>, vector<8x64xf32>
    %196 = vector.extract_strided_slice %173 {offsets = [0, 27], sizes = [8, 64], strides = [1, 1]} : vector<8x118xf32> to vector<8x64xf32>
    %c5_i32_70 = arith.constant 5 : i32
    %197 = vector.broadcast %c5_i32_70 : i32 to vector<1x64xi32>
    %198 = arith.cmpi slt, %171, %197 : vector<1x64xi32>
    %199 = vector.extract_strided_slice %173 {offsets = [0, 30], sizes = [8, 64], strides = [1, 1]} : vector<8x118xf32> to vector<8x64xf32>
    %cst_71 = arith.constant 0.000000e+00 : f32
    %200 = vector.shape_cast %198 : vector<1x64xi1> to vector<1x64xi1>
    %201 = vector.broadcast %200 : vector<1x64xi1> to vector<8x64xi1>
    %202 = vector.broadcast %cst_71 : f32 to vector<8x64xf32>
    %203 = arith.select %201, %199, %202 : vector<8x64xi1>, vector<8x64xf32>
    %c3_i32_72 = arith.constant 3 : i32
    %204 = vector.broadcast %c3_i32_72 : i32 to vector<1x64xi32>
    %205 = arith.cmpi sge, %171, %204 : vector<1x64xi32>
    %206 = vector.extract_strided_slice %173 {offsets = [0, 48], sizes = [8, 64], strides = [1, 1]} : vector<8x118xf32> to vector<8x64xf32>
    %cst_73 = arith.constant 0.000000e+00 : f32
    %207 = vector.shape_cast %205 : vector<1x64xi1> to vector<1x64xi1>
    %208 = vector.broadcast %207 : vector<1x64xi1> to vector<8x64xi1>
    %209 = vector.broadcast %cst_73 : f32 to vector<8x64xf32>
    %210 = arith.select %208, %206, %209 : vector<8x64xi1>, vector<8x64xf32>
    %211 = vector.extract_strided_slice %173 {offsets = [0, 51], sizes = [8, 64], strides = [1, 1]} : vector<8x118xf32> to vector<8x64xf32>
    %c5_i32_74 = arith.constant 5 : i32
    %212 = vector.broadcast %c5_i32_74 : i32 to vector<1x64xi32>
    %213 = arith.cmpi slt, %171, %212 : vector<1x64xi32>
    %214 = vector.extract_strided_slice %173 {offsets = [0, 54], sizes = [8, 64], strides = [1, 1]} : vector<8x118xf32> to vector<8x64xf32>
    %cst_75 = arith.constant 0.000000e+00 : f32
    %215 = vector.shape_cast %213 : vector<1x64xi1> to vector<1x64xi1>
    %216 = vector.broadcast %215 : vector<1x64xi1> to vector<8x64xi1>
    %217 = vector.broadcast %cst_75 : f32 to vector<8x64xf32>
    %218 = arith.select %216, %214, %217 : vector<8x64xi1>, vector<8x64xf32>
    %219 = tpu.concatenate %180, %181, %188, %195, %196, %203, %210, %211, %218 in 0 : vector<8x64xf32>, vector<8x64xf32>, vector<8x64xf32>, vector<8x64xf32>, vector<8x64xf32>, vector<8x64xf32>, vector<8x64xf32>, vector<8x64xf32>, vector<8x64xf32> -> vector<72x64xf32>
    %220 = tpu.iota {dimensions = array<i32: 1>} : vector<1x64xi32>
    %c7_i32_76 = arith.constant 7 : i32
    %221 = vector.broadcast %c7_i32_76 : i32 to vector<1x64xi32>
    %222 = arith.andi %220, %221 : vector<1x64xi32>
    %cst_77 = arith.constant 0.000000e+00 : f32
    %223 = vector.broadcast %cst_77 : f32 to vector<8x18xf32>
    %224 = tpu.concatenate %223, %5, %223 in 1 : vector<8x18xf32>, vector<8x64xf32>, vector<8x18xf32> -> vector<8x100xf32>
    %c2_i32 = arith.constant 2 : i32
    %225 = vector.broadcast %c2_i32 : i32 to vector<1x64xi32>
    %226 = arith.cmpi sge, %222, %225 : vector<1x64xi32>
    %227 = vector.extract_strided_slice %224 {offsets = [0, 0], sizes = [8, 64], strides = [1, 1]} : vector<8x100xf32> to vector<8x64xf32>
    %cst_78 = arith.constant 0.000000e+00 : f32
    %228 = vector.shape_cast %226 : vector<1x64xi1> to vector<1x64xi1>
    %229 = vector.broadcast %228 : vector<1x64xi1> to vector<8x64xi1>
    %230 = vector.broadcast %cst_78 : f32 to vector<8x64xf32>
    %231 = arith.select %229, %227, %230 : vector<8x64xi1>, vector<8x64xf32>
    %232 = vector.extract_strided_slice %224 {offsets = [0, 2], sizes = [8, 64], strides = [1, 1]} : vector<8x100xf32> to vector<8x64xf32>
    %c6_i32 = arith.constant 6 : i32
    %233 = vector.broadcast %c6_i32 : i32 to vector<1x64xi32>
    %234 = arith.cmpi slt, %222, %233 : vector<1x64xi32>
    %235 = vector.extract_strided_slice %224 {offsets = [0, 4], sizes = [8, 64], strides = [1, 1]} : vector<8x100xf32> to vector<8x64xf32>
    %cst_79 = arith.constant 0.000000e+00 : f32
    %236 = vector.shape_cast %234 : vector<1x64xi1> to vector<1x64xi1>
    %237 = vector.broadcast %236 : vector<1x64xi1> to vector<8x64xi1>
    %238 = vector.broadcast %cst_79 : f32 to vector<8x64xf32>
    %239 = arith.select %237, %235, %238 : vector<8x64xi1>, vector<8x64xf32>
    %c2_i32_80 = arith.constant 2 : i32
    %240 = vector.broadcast %c2_i32_80 : i32 to vector<1x64xi32>
    %241 = arith.cmpi sge, %222, %240 : vector<1x64xi32>
    %242 = vector.extract_strided_slice %224 {offsets = [0, 16], sizes = [8, 64], strides = [1, 1]} : vector<8x100xf32> to vector<8x64xf32>
    %cst_81 = arith.constant 0.000000e+00 : f32
    %243 = vector.shape_cast %241 : vector<1x64xi1> to vector<1x64xi1>
    %244 = vector.broadcast %243 : vector<1x64xi1> to vector<8x64xi1>
    %245 = vector.broadcast %cst_81 : f32 to vector<8x64xf32>
    %246 = arith.select %244, %242, %245 : vector<8x64xi1>, vector<8x64xf32>
    %247 = vector.extract_strided_slice %224 {offsets = [0, 18], sizes = [8, 64], strides = [1, 1]} : vector<8x100xf32> to vector<8x64xf32>
    %c6_i32_82 = arith.constant 6 : i32
    %248 = vector.broadcast %c6_i32_82 : i32 to vector<1x64xi32>
    %249 = arith.cmpi slt, %222, %248 : vector<1x64xi32>
    %250 = vector.extract_strided_slice %224 {offsets = [0, 20], sizes = [8, 64], strides = [1, 1]} : vector<8x100xf32> to vector<8x64xf32>
    %cst_83 = arith.constant 0.000000e+00 : f32
    %251 = vector.shape_cast %249 : vector<1x64xi1> to vector<1x64xi1>
    %252 = vector.broadcast %251 : vector<1x64xi1> to vector<8x64xi1>
    %253 = vector.broadcast %cst_83 : f32 to vector<8x64xf32>
    %254 = arith.select %252, %250, %253 : vector<8x64xi1>, vector<8x64xf32>
    %c2_i32_84 = arith.constant 2 : i32
    %255 = vector.broadcast %c2_i32_84 : i32 to vector<1x64xi32>
    %256 = arith.cmpi sge, %222, %255 : vector<1x64xi32>
    %257 = vector.extract_strided_slice %224 {offsets = [0, 32], sizes = [8, 64], strides = [1, 1]} : vector<8x100xf32> to vector<8x64xf32>
    %cst_85 = arith.constant 0.000000e+00 : f32
    %258 = vector.shape_cast %256 : vector<1x64xi1> to vector<1x64xi1>
    %259 = vector.broadcast %258 : vector<1x64xi1> to vector<8x64xi1>
    %260 = vector.broadcast %cst_85 : f32 to vector<8x64xf32>
    %261 = arith.select %259, %257, %260 : vector<8x64xi1>, vector<8x64xf32>
    %262 = vector.extract_strided_slice %224 {offsets = [0, 34], sizes = [8, 64], strides = [1, 1]} : vector<8x100xf32> to vector<8x64xf32>
    %c6_i32_86 = arith.constant 6 : i32
    %263 = vector.broadcast %c6_i32_86 : i32 to vector<1x64xi32>
    %264 = arith.cmpi slt, %222, %263 : vector<1x64xi32>
    %265 = vector.extract_strided_slice %224 {offsets = [0, 36], sizes = [8, 64], strides = [1, 1]} : vector<8x100xf32> to vector<8x64xf32>
    %cst_87 = arith.constant 0.000000e+00 : f32
    %266 = vector.shape_cast %264 : vector<1x64xi1> to vector<1x64xi1>
    %267 = vector.broadcast %266 : vector<1x64xi1> to vector<8x64xi1>
    %268 = vector.broadcast %cst_87 : f32 to vector<8x64xf32>
    %269 = arith.select %267, %265, %268 : vector<8x64xi1>, vector<8x64xf32>
    %270 = tpu.concatenate %231, %232, %239, %246, %247, %254, %261, %262, %269 in 0 : vector<8x64xf32>, vector<8x64xf32>, vector<8x64xf32>, vector<8x64xf32>, vector<8x64xf32>, vector<8x64xf32>, vector<8x64xf32>, vector<8x64xf32>, vector<8x64xf32> -> vector<72x64xf32>
    %271 = tpu.iota {dimensions = array<i32: 1>} : vector<1x64xi32>
    %c7_i32_88 = arith.constant 7 : i32
    %272 = vector.broadcast %c7_i32_88 : i32 to vector<1x64xi32>
    %273 = arith.andi %271, %272 : vector<1x64xi32>
    %cst_89 = arith.constant 0.000000e+00 : f32
    %274 = vector.broadcast %cst_89 : f32 to vector<8x9xf32>
    %275 = tpu.concatenate %274, %11, %274 in 1 : vector<8x9xf32>, vector<8x64xf32>, vector<8x9xf32> -> vector<8x82xf32>
    %c1_i32 = arith.constant 1 : i32
    %276 = vector.broadcast %c1_i32 : i32 to vector<1x64xi32>
    %277 = arith.cmpi sge, %273, %276 : vector<1x64xi32>
    %278 = vector.extract_strided_slice %275 {offsets = [0, 0], sizes = [8, 64], strides = [1, 1]} : vector<8x82xf32> to vector<8x64xf32>
    %cst_90 = arith.constant 0.000000e+00 : f32
    %279 = vector.shape_cast %277 : vector<1x64xi1> to vector<1x64xi1>
    %280 = vector.broadcast %279 : vector<1x64xi1> to vector<8x64xi1>
    %281 = vector.broadcast %cst_90 : f32 to vector<8x64xf32>
    %282 = arith.select %280, %278, %281 : vector<8x64xi1>, vector<8x64xf32>
    %283 = vector.extract_strided_slice %275 {offsets = [0, 1], sizes = [8, 64], strides = [1, 1]} : vector<8x82xf32> to vector<8x64xf32>
    %c7_i32_91 = arith.constant 7 : i32
    %284 = vector.broadcast %c7_i32_91 : i32 to vector<1x64xi32>
    %285 = arith.cmpi slt, %273, %284 : vector<1x64xi32>
    %286 = vector.extract_strided_slice %275 {offsets = [0, 2], sizes = [8, 64], strides = [1, 1]} : vector<8x82xf32> to vector<8x64xf32>
    %cst_92 = arith.constant 0.000000e+00 : f32
    %287 = vector.shape_cast %285 : vector<1x64xi1> to vector<1x64xi1>
    %288 = vector.broadcast %287 : vector<1x64xi1> to vector<8x64xi1>
    %289 = vector.broadcast %cst_92 : f32 to vector<8x64xf32>
    %290 = arith.select %288, %286, %289 : vector<8x64xi1>, vector<8x64xf32>
    %c1_i32_93 = arith.constant 1 : i32
    %291 = vector.broadcast %c1_i32_93 : i32 to vector<1x64xi32>
    %292 = arith.cmpi sge, %273, %291 : vector<1x64xi32>
    %293 = vector.extract_strided_slice %275 {offsets = [0, 8], sizes = [8, 64], strides = [1, 1]} : vector<8x82xf32> to vector<8x64xf32>
    %cst_94 = arith.constant 0.000000e+00 : f32
    %294 = vector.shape_cast %292 : vector<1x64xi1> to vector<1x64xi1>
    %295 = vector.broadcast %294 : vector<1x64xi1> to vector<8x64xi1>
    %296 = vector.broadcast %cst_94 : f32 to vector<8x64xf32>
    %297 = arith.select %295, %293, %296 : vector<8x64xi1>, vector<8x64xf32>
    %298 = vector.extract_strided_slice %275 {offsets = [0, 9], sizes = [8, 64], strides = [1, 1]} : vector<8x82xf32> to vector<8x64xf32>
    %c7_i32_95 = arith.constant 7 : i32
    %299 = vector.broadcast %c7_i32_95 : i32 to vector<1x64xi32>
    %300 = arith.cmpi slt, %273, %299 : vector<1x64xi32>
    %301 = vector.extract_strided_slice %275 {offsets = [0, 10], sizes = [8, 64], strides = [1, 1]} : vector<8x82xf32> to vector<8x64xf32>
    %cst_96 = arith.constant 0.000000e+00 : f32
    %302 = vector.shape_cast %300 : vector<1x64xi1> to vector<1x64xi1>
    %303 = vector.broadcast %302 : vector<1x64xi1> to vector<8x64xi1>
    %304 = vector.broadcast %cst_96 : f32 to vector<8x64xf32>
    %305 = arith.select %303, %301, %304 : vector<8x64xi1>, vector<8x64xf32>
    %c1_i32_97 = arith.constant 1 : i32
    %306 = vector.broadcast %c1_i32_97 : i32 to vector<1x64xi32>
    %307 = arith.cmpi sge, %273, %306 : vector<1x64xi32>
    %308 = vector.extract_strided_slice %275 {offsets = [0, 16], sizes = [8, 64], strides = [1, 1]} : vector<8x82xf32> to vector<8x64xf32>
    %cst_98 = arith.constant 0.000000e+00 : f32
    %309 = vector.shape_cast %307 : vector<1x64xi1> to vector<1x64xi1>
    %310 = vector.broadcast %309 : vector<1x64xi1> to vector<8x64xi1>
    %311 = vector.broadcast %cst_98 : f32 to vector<8x64xf32>
    %312 = arith.select %310, %308, %311 : vector<8x64xi1>, vector<8x64xf32>
    %313 = vector.extract_strided_slice %275 {offsets = [0, 17], sizes = [8, 64], strides = [1, 1]} : vector<8x82xf32> to vector<8x64xf32>
    %c7_i32_99 = arith.constant 7 : i32
    %314 = vector.broadcast %c7_i32_99 : i32 to vector<1x64xi32>
    %315 = arith.cmpi slt, %273, %314 : vector<1x64xi32>
    %316 = vector.extract_strided_slice %275 {offsets = [0, 18], sizes = [8, 64], strides = [1, 1]} : vector<8x82xf32> to vector<8x64xf32>
    %cst_100 = arith.constant 0.000000e+00 : f32
    %317 = vector.shape_cast %315 : vector<1x64xi1> to vector<1x64xi1>
    %318 = vector.broadcast %317 : vector<1x64xi1> to vector<8x64xi1>
    %319 = vector.broadcast %cst_100 : f32 to vector<8x64xf32>
    %320 = arith.select %318, %316, %319 : vector<8x64xi1>, vector<8x64xf32>
    %321 = tpu.concatenate %282, %283, %290, %297, %298, %305, %312, %313, %320 in 0 : vector<8x64xf32>, vector<8x64xf32>, vector<8x64xf32>, vector<8x64xf32>, vector<8x64xf32>, vector<8x64xf32>, vector<8x64xf32>, vector<8x64xf32>, vector<8x64xf32> -> vector<72x64xf32>
    %322 = tpu.concatenate %219, %270, %321 in 0 : vector<72x64xf32>, vector<72x64xf32>, vector<72x64xf32> -> vector<216x64xf32>
    %c0_101 = arith.constant 0 : index
    %c0_102 = arith.constant 0 : index
    %323 = vector.load %arg6[%c0_101, %c0_102] : memref<16x216xf32, #tpu.memory_space<vmem>>, vector<16x216xf32>
    %cst_103 = arith.constant dense<0.000000e+00> : vector<16x64xf32>
    %324 = tpu.matmul %323, %322, %cst_103 {dimension_numbers = #tpu.dot_dimension_numbers<[1], [0], [0], [1], [0, 0, 1, 1], [], []>} : vector<16x216xf32>, vector<216x64xf32>, vector<16x64xf32> -> vector<16x64xf32>
    %c1 = arith.constant 1 : index
    %c0_104 = arith.constant 0 : index
    %c0_105 = arith.constant 0 : index
    %325 = vector.load %arg8[%c1, %c0_104, %c0_105] : memref<3x16x1xf32, #tpu.memory_space<vmem>>, vector<1x16x1xf32>
    %326 = vector.shape_cast %325 : vector<1x16x1xf32> to vector<16x1xf32>
    %327 = vector.broadcast %326 : vector<16x1xf32> to vector<16x64xf32>
    %328 = arith.addf %324, %327 : vector<16x64xf32>
    %cst_106 = arith.constant 0.000000e+00 : f32
    %329 = vector.broadcast %cst_106 : f32 to vector<16x64xf32>
    %330 = arith.maximumf %328, %329 : vector<16x64xf32>
    %c0_107 = arith.constant 0 : index
    %c0_108 = arith.constant 0 : index
    %331 = vector.load %arg7[%c0_107, %c0_108] : memref<16x72xf32, #tpu.memory_space<vmem>>, vector<16x72xf32>
    %332 = tpu.iota {dimensions = array<i32: 1>} : vector<1x16xi32>
    %c3_i32_109 = arith.constant 3 : i32
    %333 = vector.broadcast %c3_i32_109 : i32 to vector<1x16xi32>
    %334 = arith.andi %332, %333 : vector<1x16xi32>
    %cst_110 = arith.constant 0.000000e+00 : f32
    %335 = vector.broadcast %cst_110 : f32 to vector<8x5xf32>
    %336 = tpu.concatenate %335, %7, %335 in 1 : vector<8x5xf32>, vector<8x16xf32>, vector<8x5xf32> -> vector<8x26xf32>
    %c1_i32_111 = arith.constant 1 : i32
    %337 = vector.broadcast %c1_i32_111 : i32 to vector<1x16xi32>
    %338 = arith.cmpi sge, %334, %337 : vector<1x16xi32>
    %339 = vector.extract_strided_slice %336 {offsets = [0, 0], sizes = [8, 16], strides = [1, 1]} : vector<8x26xf32> to vector<8x16xf32>
    %cst_112 = arith.constant 0.000000e+00 : f32
    %340 = vector.shape_cast %338 : vector<1x16xi1> to vector<1x16xi1>
    %341 = vector.broadcast %340 : vector<1x16xi1> to vector<8x16xi1>
    %342 = vector.broadcast %cst_112 : f32 to vector<8x16xf32>
    %343 = arith.select %341, %339, %342 : vector<8x16xi1>, vector<8x16xf32>
    %344 = vector.extract_strided_slice %336 {offsets = [0, 1], sizes = [8, 16], strides = [1, 1]} : vector<8x26xf32> to vector<8x16xf32>
    %c3_i32_113 = arith.constant 3 : i32
    %345 = vector.broadcast %c3_i32_113 : i32 to vector<1x16xi32>
    %346 = arith.cmpi slt, %334, %345 : vector<1x16xi32>
    %347 = vector.extract_strided_slice %336 {offsets = [0, 2], sizes = [8, 16], strides = [1, 1]} : vector<8x26xf32> to vector<8x16xf32>
    %cst_114 = arith.constant 0.000000e+00 : f32
    %348 = vector.shape_cast %346 : vector<1x16xi1> to vector<1x16xi1>
    %349 = vector.broadcast %348 : vector<1x16xi1> to vector<8x16xi1>
    %350 = vector.broadcast %cst_114 : f32 to vector<8x16xf32>
    %351 = arith.select %349, %347, %350 : vector<8x16xi1>, vector<8x16xf32>
    %c1_i32_115 = arith.constant 1 : i32
    %352 = vector.broadcast %c1_i32_115 : i32 to vector<1x16xi32>
    %353 = arith.cmpi sge, %334, %352 : vector<1x16xi32>
    %354 = vector.extract_strided_slice %336 {offsets = [0, 4], sizes = [8, 16], strides = [1, 1]} : vector<8x26xf32> to vector<8x16xf32>
    %cst_116 = arith.constant 0.000000e+00 : f32
    %355 = vector.shape_cast %353 : vector<1x16xi1> to vector<1x16xi1>
    %356 = vector.broadcast %355 : vector<1x16xi1> to vector<8x16xi1>
    %357 = vector.broadcast %cst_116 : f32 to vector<8x16xf32>
    %358 = arith.select %356, %354, %357 : vector<8x16xi1>, vector<8x16xf32>
    %359 = vector.extract_strided_slice %336 {offsets = [0, 5], sizes = [8, 16], strides = [1, 1]} : vector<8x26xf32> to vector<8x16xf32>
    %c3_i32_117 = arith.constant 3 : i32
    %360 = vector.broadcast %c3_i32_117 : i32 to vector<1x16xi32>
    %361 = arith.cmpi slt, %334, %360 : vector<1x16xi32>
    %362 = vector.extract_strided_slice %336 {offsets = [0, 6], sizes = [8, 16], strides = [1, 1]} : vector<8x26xf32> to vector<8x16xf32>
    %cst_118 = arith.constant 0.000000e+00 : f32
    %363 = vector.shape_cast %361 : vector<1x16xi1> to vector<1x16xi1>
    %364 = vector.broadcast %363 : vector<1x16xi1> to vector<8x16xi1>
    %365 = vector.broadcast %cst_118 : f32 to vector<8x16xf32>
    %366 = arith.select %364, %362, %365 : vector<8x16xi1>, vector<8x16xf32>
    %c1_i32_119 = arith.constant 1 : i32
    %367 = vector.broadcast %c1_i32_119 : i32 to vector<1x16xi32>
    %368 = arith.cmpi sge, %334, %367 : vector<1x16xi32>
    %369 = vector.extract_strided_slice %336 {offsets = [0, 8], sizes = [8, 16], strides = [1, 1]} : vector<8x26xf32> to vector<8x16xf32>
    %cst_120 = arith.constant 0.000000e+00 : f32
    %370 = vector.shape_cast %368 : vector<1x16xi1> to vector<1x16xi1>
    %371 = vector.broadcast %370 : vector<1x16xi1> to vector<8x16xi1>
    %372 = vector.broadcast %cst_120 : f32 to vector<8x16xf32>
    %373 = arith.select %371, %369, %372 : vector<8x16xi1>, vector<8x16xf32>
    %374 = vector.extract_strided_slice %336 {offsets = [0, 9], sizes = [8, 16], strides = [1, 1]} : vector<8x26xf32> to vector<8x16xf32>
    %c3_i32_121 = arith.constant 3 : i32
    %375 = vector.broadcast %c3_i32_121 : i32 to vector<1x16xi32>
    %376 = arith.cmpi slt, %334, %375 : vector<1x16xi32>
    %377 = vector.extract_strided_slice %336 {offsets = [0, 10], sizes = [8, 16], strides = [1, 1]} : vector<8x26xf32> to vector<8x16xf32>
    %cst_122 = arith.constant 0.000000e+00 : f32
    %378 = vector.shape_cast %376 : vector<1x16xi1> to vector<1x16xi1>
    %379 = vector.broadcast %378 : vector<1x16xi1> to vector<8x16xi1>
    %380 = vector.broadcast %cst_122 : f32 to vector<8x16xf32>
    %381 = arith.select %379, %377, %380 : vector<8x16xi1>, vector<8x16xf32>
    %382 = tpu.concatenate %343, %344, %351, %358, %359, %366, %373, %374, %381 in 0 : vector<8x16xf32>, vector<8x16xf32>, vector<8x16xf32>, vector<8x16xf32>, vector<8x16xf32>, vector<8x16xf32>, vector<8x16xf32>, vector<8x16xf32>, vector<8x16xf32> -> vector<72x16xf32>
    %cst_123 = arith.constant dense<0.000000e+00> : vector<16x16xf32>
    %383 = tpu.matmul %331, %382, %cst_123 {dimension_numbers = #tpu.dot_dimension_numbers<[1], [0], [0], [1], [0, 0, 1, 1], [], []>} : vector<16x72xf32>, vector<72x16xf32>, vector<16x16xf32> -> vector<16x16xf32>
    %c2 = arith.constant 2 : index
    %c0_124 = arith.constant 0 : index
    %c0_125 = arith.constant 0 : index
    %384 = vector.load %arg8[%c2, %c0_124, %c0_125] : memref<3x16x1xf32, #tpu.memory_space<vmem>>, vector<1x16x1xf32>
    %385 = vector.shape_cast %384 : vector<1x16x1xf32> to vector<16x1xf32>
    %386 = vector.broadcast %385 : vector<16x1xf32> to vector<16x16xf32>
    %387 = arith.addf %383, %386 : vector<16x16xf32>
    %cst_126 = arith.constant 0.000000e+00 : f32
    %388 = vector.broadcast %cst_126 : f32 to vector<16x16xf32>
    %389 = arith.maximumf %387, %388 : vector<16x16xf32>
    %c0_127 = arith.constant 0 : index
    %c0_128 = arith.constant 0 : index
    %390 = vector.load %arg11[%c0_127, %c0_128] : memref<256x64xf32, #tpu.memory_space<vmem>>, vector<256x64xf32>
    %cst_129 = arith.constant dense<0.000000e+00> : vector<16x64xf32>
    %391 = tpu.matmul %168, %390, %cst_129 {dimension_numbers = #tpu.dot_dimension_numbers<[1], [0], [0], [1], [0, 0, 1, 1], [], []>} : vector<16x256xf32>, vector<256x64xf32>, vector<16x64xf32> -> vector<16x64xf32>
    %c0_130 = arith.constant 0 : index
    %c0_131 = arith.constant 0 : index
    %392 = vector.load %arg13[%c0_130, %c0_131] : memref<64x16xf32, #tpu.memory_space<vmem>>, vector<64x16xf32>
    %cst_132 = arith.constant dense<0.000000e+00> : vector<16x16xf32>
    %393 = tpu.matmul %330, %392, %cst_132 {dimension_numbers = #tpu.dot_dimension_numbers<[1], [0], [0], [1], [0, 0, 1, 1], [], []>} : vector<16x64xf32>, vector<64x16xf32>, vector<16x16xf32> -> vector<16x16xf32>
    %c0_133 = arith.constant 0 : index
    %c0_134 = arith.constant 0 : index
    %c0_135 = arith.constant 0 : index
    %394 = vector.load %arg9[%c0_133, %c0_134, %c0_135] : memref<6x8x16xf32, #tpu.memory_space<vmem>>, vector<1x8x16xf32>
    %395 = vector.shape_cast %394 : vector<1x8x16xf32> to vector<8x16xf32>
    %cst_136 = arith.constant dense<0.000000e+00> : vector<8x256xf32>
    %396 = tpu.matmul %395, %168, %cst_136 {dimension_numbers = #tpu.dot_dimension_numbers<[1], [0], [0], [1], [0, 0, 1, 1], [], []>} : vector<8x16xf32>, vector<16x256xf32>, vector<8x256xf32> -> vector<8x256xf32>
    %c0_137 = arith.constant 0 : index
    %c0_138 = arith.constant 0 : index
    %c0_139 = arith.constant 0 : index
    %397 = vector.load %arg10[%c0_137, %c0_138, %c0_139] : memref<4x8x1xf32, #tpu.memory_space<vmem>>, vector<1x8x1xf32>
    %398 = vector.shape_cast %397 : vector<1x8x1xf32> to vector<8x1xf32>
    %399 = vector.broadcast %398 : vector<8x1xf32> to vector<8x256xf32>
    %400 = arith.addf %396, %399 : vector<8x256xf32>
    %cst_140 = arith.constant 0.000000e+00 : f32
    %401 = vector.broadcast %cst_140 : f32 to vector<8x256xf32>
    %402 = arith.maximumf %400, %401 : vector<8x256xf32>
    %c1_141 = arith.constant 1 : index
    %c0_142 = arith.constant 0 : index
    %c0_143 = arith.constant 0 : index
    %403 = vector.load %arg9[%c1_141, %c0_142, %c0_143] : memref<6x8x16xf32, #tpu.memory_space<vmem>>, vector<1x8x16xf32>
    %404 = vector.shape_cast %403 : vector<1x8x16xf32> to vector<8x16xf32>
    %cst_144 = arith.constant dense<0.000000e+00> : vector<8x64xf32>
    %405 = tpu.matmul %404, %330, %cst_144 {dimension_numbers = #tpu.dot_dimension_numbers<[1], [0], [0], [1], [0, 0, 1, 1], [], []>} : vector<8x16xf32>, vector<16x64xf32>, vector<8x64xf32> -> vector<8x64xf32>
    %c2_145 = arith.constant 2 : index
    %c0_146 = arith.constant 0 : index
    %c0_147 = arith.constant 0 : index
    %406 = vector.load %arg9[%c2_145, %c0_146, %c0_147] : memref<6x8x16xf32, #tpu.memory_space<vmem>>, vector<1x8x16xf32>
    %407 = vector.shape_cast %406 : vector<1x8x16xf32> to vector<8x16xf32>
    %cst_148 = arith.constant dense<0.000000e+00> : vector<8x64xf32>
    %408 = tpu.matmul %407, %391, %cst_148 {dimension_numbers = #tpu.dot_dimension_numbers<[1], [0], [0], [1], [0, 0, 1, 1], [], []>} : vector<8x16xf32>, vector<16x64xf32>, vector<8x64xf32> -> vector<8x64xf32>
    %409 = arith.addf %405, %408 : vector<8x64xf32>
    %c1_149 = arith.constant 1 : index
    %c0_150 = arith.constant 0 : index
    %c0_151 = arith.constant 0 : index
    %410 = vector.load %arg10[%c1_149, %c0_150, %c0_151] : memref<4x8x1xf32, #tpu.memory_space<vmem>>, vector<1x8x1xf32>
    %411 = vector.shape_cast %410 : vector<1x8x1xf32> to vector<8x1xf32>
    %412 = vector.broadcast %411 : vector<8x1xf32> to vector<8x64xf32>
    %413 = arith.addf %409, %412 : vector<8x64xf32>
    %cst_152 = arith.constant 0.000000e+00 : f32
    %414 = vector.broadcast %cst_152 : f32 to vector<8x64xf32>
    %415 = arith.maximumf %413, %414 : vector<8x64xf32>
    %c3 = arith.constant 3 : index
    %c0_153 = arith.constant 0 : index
    %c0_154 = arith.constant 0 : index
    %416 = vector.load %arg9[%c3, %c0_153, %c0_154] : memref<6x8x16xf32, #tpu.memory_space<vmem>>, vector<1x8x16xf32>
    %417 = vector.shape_cast %416 : vector<1x8x16xf32> to vector<8x16xf32>
    %cst_155 = arith.constant dense<0.000000e+00> : vector<8x64xf32>
    %418 = tpu.matmul %417, %330, %cst_155 {dimension_numbers = #tpu.dot_dimension_numbers<[1], [0], [0], [1], [0, 0, 1, 1], [], []>} : vector<8x16xf32>, vector<16x64xf32>, vector<8x64xf32> -> vector<8x64xf32>
    %c2_156 = arith.constant 2 : index
    %c0_157 = arith.constant 0 : index
    %c0_158 = arith.constant 0 : index
    %419 = vector.load %arg10[%c2_156, %c0_157, %c0_158] : memref<4x8x1xf32, #tpu.memory_space<vmem>>, vector<1x8x1xf32>
    %420 = vector.shape_cast %419 : vector<1x8x1xf32> to vector<8x1xf32>
    %421 = vector.broadcast %420 : vector<8x1xf32> to vector<8x64xf32>
    %422 = arith.addf %418, %421 : vector<8x64xf32>
    %cst_159 = arith.constant 0.000000e+00 : f32
    %423 = vector.broadcast %cst_159 : f32 to vector<8x64xf32>
    %424 = arith.maximumf %422, %423 : vector<8x64xf32>
    %c4 = arith.constant 4 : index
    %c0_160 = arith.constant 0 : index
    %c0_161 = arith.constant 0 : index
    %425 = vector.load %arg9[%c4, %c0_160, %c0_161] : memref<6x8x16xf32, #tpu.memory_space<vmem>>, vector<1x8x16xf32>
    %426 = vector.shape_cast %425 : vector<1x8x16xf32> to vector<8x16xf32>
    %cst_162 = arith.constant dense<0.000000e+00> : vector<8x16xf32>
    %427 = tpu.matmul %426, %389, %cst_162 {dimension_numbers = #tpu.dot_dimension_numbers<[1], [0], [0], [1], [0, 0, 1, 1], [], []>} : vector<8x16xf32>, vector<16x16xf32>, vector<8x16xf32> -> vector<8x16xf32>
    %c5 = arith.constant 5 : index
    %c0_163 = arith.constant 0 : index
    %c0_164 = arith.constant 0 : index
    %428 = vector.load %arg9[%c5, %c0_163, %c0_164] : memref<6x8x16xf32, #tpu.memory_space<vmem>>, vector<1x8x16xf32>
    %429 = vector.shape_cast %428 : vector<1x8x16xf32> to vector<8x16xf32>
    %cst_165 = arith.constant dense<0.000000e+00> : vector<8x16xf32>
    %430 = tpu.matmul %429, %393, %cst_165 {dimension_numbers = #tpu.dot_dimension_numbers<[1], [0], [0], [1], [0, 0, 1, 1], [], []>} : vector<8x16xf32>, vector<16x16xf32>, vector<8x16xf32> -> vector<8x16xf32>
    %431 = arith.addf %427, %430 : vector<8x16xf32>
    %c3_166 = arith.constant 3 : index
    %c0_167 = arith.constant 0 : index
    %c0_168 = arith.constant 0 : index
    %432 = vector.load %arg10[%c3_166, %c0_167, %c0_168] : memref<4x8x1xf32, #tpu.memory_space<vmem>>, vector<1x8x1xf32>
    %433 = vector.shape_cast %432 : vector<1x8x1xf32> to vector<8x1xf32>
    %434 = vector.broadcast %433 : vector<8x1xf32> to vector<8x16xf32>
    %435 = arith.addf %431, %434 : vector<8x16xf32>
    %cst_169 = arith.constant 0.000000e+00 : f32
    %436 = vector.broadcast %cst_169 : f32 to vector<8x16xf32>
    %437 = arith.maximumf %435, %436 : vector<8x16xf32>
    %438 = arith.addf %402, %1 : vector<8x256xf32>
    %439 = arith.addf %415, %3 : vector<8x64xf32>
    %440 = arith.addf %424, %5 : vector<8x64xf32>
    %441 = arith.addf %437, %7 : vector<8x16xf32>
    %cst_170 = arith.constant 0.000000e+00 : f32
    %442 = vector.broadcast %cst_170 : f32 to vector<8x112xf32>
    %443 = tpu.concatenate %439, %440, %441, %442 in 1 : vector<8x64xf32>, vector<8x64xf32>, vector<8x16xf32>, vector<8x112xf32> -> vector<8x256xf32>
    %444 = tpu.concatenate %438, %443 in 0 : vector<8x256xf32>, vector<8x256xf32> -> vector<16x256xf32>
    %c0_171 = arith.constant 0 : index
    %c0_172 = arith.constant 0 : index
    %c0_173 = arith.constant 0 : index
    %445 = vector.load %arg15[%c0_171, %c0_172, %c0_173] : memref<1x16x256xf32, #tpu.memory_space<vmem>>, vector<1x16x256xf32>
    %446 = vector.shape_cast %445 : vector<1x16x256xf32> to vector<16x256xf32>
    %447 = vector.shape_cast %444 : vector<16x256xf32> to vector<1x16x256xf32>
    tpu.vector_store %arg15[%c0_171, %c0_172, %c0_173], %447 {strides = array<i32>} : memref<1x16x256xf32, #tpu.memory_space<vmem>>, vector<1x16x256xf32>,
    return
  }
  func.func @transform_0(%arg0: i32) -> (i32, i32, i32) {
    %c0_i32 = arith.constant 0 : i32
    %c0_i32_0 = arith.constant 0 : i32
    %c0_i32_1 = arith.constant 0 : i32
    return %arg0, %c0_i32, %c0_i32_0 : i32, i32, i32
  }
  func.func @transform_1(%arg0: i32) -> (i32, i32, i32) {
    %c0_i32 = arith.constant 0 : i32
    %c0_i32_0 = arith.constant 0 : i32
    %c0_i32_1 = arith.constant 0 : i32
    return %arg0, %c0_i32, %c0_i32_0 : i32, i32, i32
  }
  func.func @transform_2(%arg0: i32) -> (i32, i32, i32) {
    %c0_i32 = arith.constant 0 : i32
    %c0_i32_0 = arith.constant 0 : i32
    %c0_i32_1 = arith.constant 0 : i32
    return %arg0, %c0_i32, %c0_i32_0 : i32, i32, i32
  }
  func.func @transform_3(%arg0: i32) -> (i32, i32, i32) {
    %c0_i32 = arith.constant 0 : i32
    %c0_i32_0 = arith.constant 0 : i32
    %c0_i32_1 = arith.constant 0 : i32
    return %arg0, %c0_i32, %c0_i32_0 : i32, i32, i32
  }
  func.func @transform_4(%arg0: i32) -> (i32, i32) {
    %c0_i32 = arith.constant 0 : i32
    %c0_i32_0 = arith.constant 0 : i32
    %c0_i32_1 = arith.constant 0 : i32
    return %c0_i32, %c0_i32_0 : i32, i32
  }
  func.func @transform_5(%arg0: i32) -> (i32, i32) {
    %c0_i32 = arith.constant 0 : i32
    %c0_i32_0 = arith.constant 0 : i32
    %c0_i32_1 = arith.constant 0 : i32
    return %c0_i32, %c0_i32_0 : i32, i32
  }
  func.func @transform_6(%arg0: i32) -> (i32, i32) {
    %c0_i32 = arith.constant 0 : i32
    %c0_i32_0 = arith.constant 0 : i32
    %c0_i32_1 = arith.constant 0 : i32
    return %c0_i32, %c0_i32_0 : i32, i32
  }
  func.func @transform_7(%arg0: i32) -> (i32, i32, i32) {
    %c0_i32 = arith.constant 0 : i32
    %c0_i32_0 = arith.constant 0 : i32
    %c0_i32_1 = arith.constant 0 : i32
    %c0_i32_2 = arith.constant 0 : i32
    return %c0_i32, %c0_i32_0, %c0_i32_1 : i32, i32, i32
  }
  func.func @transform_8(%arg0: i32) -> (i32, i32, i32) {
    %c0_i32 = arith.constant 0 : i32
    %c0_i32_0 = arith.constant 0 : i32
    %c0_i32_1 = arith.constant 0 : i32
    %c0_i32_2 = arith.constant 0 : i32
    return %c0_i32, %c0_i32_0, %c0_i32_1 : i32, i32, i32
  }
  func.func @transform_9(%arg0: i32) -> (i32, i32, i32) {
    %c0_i32 = arith.constant 0 : i32
    %c0_i32_0 = arith.constant 0 : i32
    %c0_i32_1 = arith.constant 0 : i32
    %c0_i32_2 = arith.constant 0 : i32
    return %c0_i32, %c0_i32_0, %c0_i32_1 : i32, i32, i32
  }
  func.func @transform_10(%arg0: i32) -> (i32, i32) {
    %c0_i32 = arith.constant 0 : i32
    %c0_i32_0 = arith.constant 0 : i32
    %c0_i32_1 = arith.constant 0 : i32
    return %c0_i32, %c0_i32_0 : i32, i32
  }
  func.func @transform_11(%arg0: i32) -> (i32, i32) {
    %c0_i32 = arith.constant 0 : i32
    %c0_i32_0 = arith.constant 0 : i32
    %c0_i32_1 = arith.constant 0 : i32
    return %c0_i32, %c0_i32_0 : i32, i32
  }
  func.func @transform_12(%arg0: i32) -> (i32, i32) {
    %c0_i32 = arith.constant 0 : i32
    %c0_i32_0 = arith.constant 0 : i32
    %c0_i32_1 = arith.constant 0 : i32
    return %c0_i32, %c0_i32_0 : i32, i32
  }
  func.func @transform_13(%arg0: i32) -> (i32, i32) {
    %c0_i32 = arith.constant 0 : i32
    %c0_i32_0 = arith.constant 0 : i32
    %c0_i32_1 = arith.constant 0 : i32
    return %c0_i32, %c0_i32_0 : i32, i32
  }
  func.func @transform_14(%arg0: i32) -> (i32, i32, i32) {
    %c0_i32 = arith.constant 0 : i32
    %c0_i32_0 = arith.constant 0 : i32
    %c0_i32_1 = arith.constant 0 : i32
    return %arg0, %c0_i32, %c0_i32_0 : i32, i32, i32
  }
}

</mosaic_0001>

<bundles_post_ra>
// kernel: tpu_custom_call.1
= control target key start
LH: loop header
LB: loop body
LE: loop exit
PB: predicated region body
PF: predicated region fallthrough
CT: control target
= control target key end

     0   :  { %s3970_s0 = inlined_call_operand.vmem [shape: f32[2,8,256], index: 0, kind: input, shape index: {}]   ;;  %s3971_s1 = inlined_call_operand.vmem [shape: f32[2,8,64], index: 1, kind: input, shape index: {}]   ;;  %s3972_s2 = inlined_call_operand.vmem [shape: f32[2,8,64], index: 2, kind: input, shape index: {}]   ;;  %s3973_s3 = inlined_call_operand.vmem [shape: f32[2,8,16], index: 3, kind: input, shape index: {}]   ;;  %s3974_s4 = inlined_call_operand.vmem [shape: f32[16,144], index: 4, kind: input, shape index: {}]   ;;  %s3975_s5 = inlined_call_operand.vmem [shape: f32[16,216], index: 5, kind: input, shape index: {}]   ;;  %s3976_s6 = inlined_call_operand.vmem [shape: f32[16,72], index: 6, kind: input, shape index: {}]   ;;  %s3977_s7 = inlined_call_operand.vmem [shape: f32[3,16,1], index: 7, kind: input, shape index: {}]   ;;  %s3978_s8 = inlined_call_operand.vmem [shape: f32[6,8,16], index: 8, kind: input, shape index: {}]   ;;  %s3979_s9 = inlined_call_operand.vmem [shape: f32[4,8,1], index: 9, kind: input, shape index: {}]   ;;  %s3980_s10 = inlined_call_operand.vmem [shape: f32[256,64], index: 10, kind: input, shape index: {}]   ;;  %s3981_s11 = inlined_call_operand.vmem [shape: f32[64,256], index: 11, kind: input, shape index: {}]   ;;  %s3982_s12 = inlined_call_operand.vmem [shape: f32[64,16], index: 12, kind: input, shape index: {}]   ;;  %s3983_s13 = inlined_call_operand.vmem [shape: f32[16,64], index: 13, kind: input, shape index: {}]   ;;  %s3984_s14 = inlined_call_operand.hbm [shape: f32[2,16,256], index: 14, kind: output, shape index: {}]  }
   0x1   :  { %4005 = sst [smem:[#allocation9_spill]] %s3970_s0 }
   0x2   :  { %4006 = sst [smem:[#allocation10_spill]] %s3973_s3 }
   0x3   :  { %4007 = sst [smem:[#allocation11_spill]] %s3983_s13 }
   0x4   :  { %19 = vsyncpa [#allocation3], 0 }
   0x5   :  { %21 = vsyncpa [#allocation3 + $0x1], 0  ;;  %s3016_s29 = smov 0   ;;  %s3018_s30 = smov 0  }
   0x6   :  { %s3020_s15 = smov 0   ;;  %s3022_s16 = smov 0  }
   0x7 LB: > { %4008 = sst [smem:[#allocation5_spill]] %s2892_s15  ;;  %s3037_s17 = sadd.s32 4294967295, %s2896_s16   ;;  %s2896_s16 = sphi %s3022_s16, %s4091_s16   ;;  %s2892_s15 = sphi %s3020_s15, %s4093_s15   ;;  %s2888_s30 = sphi %s3018_s30, %s4095_s30   ;;  %s2884_s29 = sphi %s3016_s29, %s4094_s29  }
   0x8   : > { %s2205_s18 = sadd.s32 4294967294, %s2896_s16   ;;  %s3041_s19 = sadd.s32 1, %s2896_s16  }
   0x9   : > { %4009 = sst [smem:[#allocation6_spill]] %s3041_s19  ;;  %s348_s20 = sadd.s32 1, %s2892_s15 }
   0xa   : > { %s345_s21 = ssub.s32 %s2896_s16, %s3041_s19  ;;  %p358_p0 = scmp.ne.s32.totalorder %s2892_s15, %s2888_s30 }
   0xb   : > { %p346_p1 = scmp.eq.s32.totalorder %s345_s21, 0  ;;  %p359_p2 = scmp.eq.s32.totalorder %s3037_s17, 1 }
   0xc   : > { %p364_p3 = scmp.ne.s32.totalorder %s2888_s30, %s2884_s29  ;;  %p365_p4 = scmp.eq.s32.totalorder %s2205_s18, 1 }
   0xd   : > { %s3052_s22 = scalar_select %p346_p1, %s2892_s15, %s348_s20  }
   0xe   : > { %p3054_p5 = por %p359_p2, %p358_p0  ;;  %p3058_p6 = por %p365_p4, %p364_p3 }
   0xf   : > { %4010 = sst [smem:[#allocation7_spill]] %s3052_s22  ;;  %p2208_p7 = scmp.ge.s32.totalorder %s2896_s16, 1 }
  0x10   : > { %s4012_s24 = scalar_select %p3058_p6, 1, 0 }
  0x11   : > { %p442_p8 = scmp.lt.s32.totalorder %s2896_s16, 3 }
  0x12   : > { %4013 = sst [smem:[#allocation8_spill]] %s4012_s24 }
  0x13   : > { %p443_p9 = pnand %p2208_p7, %p442_p8 }
  0x14   : > { %s4014_s13 = sld [smem:[#allocation11_spill]] (!%p443_p9)  ;;  %p500_p10 = scmp.lt.s32.totalorder (!%p443_p9), %s3037_s17, 1  ;;  %v2898_v2 = vmov (!%p443_p9), 0.0|0.0   ;;  %vm3997_vm0 = vmmov (!%p443_p9), 0   ;;  %v2900_v4 = vmov (!%p443_p9), 0.0   ;;  %v523_v5 = vld [vmem:[%s3981_s11 + $0x8] sm:$0xff] (!%p443_p9)  ;;  %v689_v53 = vlaneseq (!%p443_p9) }
  0x15   : > { %446 = sbr.rel (%p443_p9) target bundleno = 1171 (0x493), region = 76  ;;  %2481 = vmatprep.subr.bf16.mxu1 (!%p443_p9), %v2898_v2  ;;  %2387 = vmatprep.mubr.msk.f32.mxu1 (!%p443_p9), %vm3997_vm0, %v2900_v4  ;;  %v525_v6 = vld [vmem:[%s3981_s11 + $0x18] sm:$0xff] (!%p443_p9)  ;;  %v522_v7 = vld [vmem:[%s3981_s11] sm:$0xff] (!%p443_p9)  ;;  %v524_v9 = vld [vmem:[%s3981_s11 + $0x10] sm:$0xff] (!%p443_p9)  ;;  %vm4000_vm1 = vcmask (!%p443_p9), 130048   ;;  %s4015_s3 = sld [smem:[#allocation10_spill]] (!%p443_p9) }
  0x16   : > { %v2465_v8 = vpack.c.bf16 (!%p443_p9), %v525_v6, %v523_v5  ;;  %v527_v10 = vld [vmem:[%s3981_s11 + $0x28] sm:$0xff] (!%p443_p9)  ;;  %v529_v11 = vld [vmem:[%s3981_s11 + $0x38] sm:$0xff] (!%p443_p9)  ;;  %606 = vmatprep.mubr.f32.mxu0 (!%p443_p9), %v2900_v4  ;;  %v2467_v12 = vpack.c.bf16 (!%p443_p9), %v524_v9, %v522_v7  ;;  %v526_v14 = vld [vmem:[%s3981_s11 + $0x20] sm:$0xff] (!%p443_p9)  ;;  %s2901_s15 = smov (!%p443_p9), 27   ;;  %s2902_s25 = smov (!%p443_p9), 18   ;;  %vm3996_vm2 = vcmask (!%p443_p9), 523264  }
  0x17   : > { %v2469_v13 = vpack.c.bf16 (!%p443_p9), %v529_v11, %v527_v10  ;;  %v528_v15 = vld [vmem:[%s3981_s11 + $0x30] sm:$0xff] (!%p443_p9)  ;;  %v531_v16 = vld [vmem:[%s3981_s11 + $0x48] sm:$0xff] (!%p443_p9)  ;;  %v533_v17 = vld [vmem:[%s3981_s11 + $0x58] sm:$0xff] (!%p443_p9)  ;;  %s4016_s0 = sld [smem:[#allocation9_spill]] (!%p443_p9)  ;;  %vm1022_vm3 = vcmask (!%p443_p9), 220160   ;;  %vm1024_vm4 = vcmask (!%p443_p9), 744448  }
  0x18   : > { %2466 = vmatprep.subr.bf16.mxu0 (!%p443_p9), %v2465_v8  ;;  %v2471_v18 = vpack.c.bf16 (!%p443_p9), %v528_v15, %v526_v14  ;;  %v2473_v20 = vpack.c.bf16 (!%p443_p9), %v533_v17, %v531_v16  ;;  %v530_v21 = vld [vmem:[%s3981_s11 + $0x40] sm:$0xff] (!%p443_p9)  ;;  %v532_v22 = vld [vmem:[%s3981_s11 + $0x50] sm:$0xff] (!%p443_p9)  ;;  %v535_v23 = vld [vmem:[%s3981_s11 + $0x68] sm:$0xff] (!%p443_p9)  ;;  %s2905_s27 = smov (!%p443_p9), 60   ;;  %s2906_s18 = smov (!%p443_p9), 98   ;;  %vm1067_vm5 = vcmask (!%p443_p9), 146432  }
  0x19   : > { %2468 = vmatpush1.bf16.msra.mxu0 (!%p443_p9), %v2467_v12  ;;  %v537_v24 = vld [vmem:[%s3981_s11 + $0x78] sm:$0xff] (!%p443_p9)  ;;  %v2475_v26 = vpack.c.bf16 (!%p443_p9), %v532_v22, %v530_v21  ;;  %v534_v29 = vld [vmem:[%s3981_s11 + $0x60] sm:$0xff] (!%p443_p9)  ;;  %v536_v30 = vld [vmem:[%s3981_s11 + $0x70] sm:$0xff] (!%p443_p9)  ;;  %s3995_s20 = smov (!%p443_p9), 124   ;;  %vm1069_vm6 = vcmask (!%p443_p9), 670720   ;;  %s2911_s22 = smov (!%p443_p9), 108  }
  0x1a   : > { %v613_v0 = vld [vmem:[%s4014_s13] sm:$0xff] (!%p443_p9)  ;;  %v614_v1 = vld [vmem:[%s4014_s13 + $0x8] sm:$0xff] (!%p443_p9)  ;;  %2470 = vmatprep.subr.bf16.mxu0 (!%p443_p9), %v2469_v13  ;;  %v2477_v28 = vpack.c.bf16 (!%p443_p9), %v537_v24, %v535_v23  ;;  %v2479_v31 = vpack.c.bf16 (!%p443_p9), %v536_v30, %v534_v29  ;;  %s3992_s13 = smov (!%p443_p9), 110   ;;  %v3214_v54 = vand.u32 (!%p443_p9), 127, %v689_v53  ;;  %vm1112_vm7 = vcmask (!%p443_p9), 72704  }
  0x1b   : > { %v2482_v3 = vpack.c.bf16 (!%p443_p9), %v614_v1, %v613_v0  ;;  %v916_v46 = vld [vmem:[%s3974_s4 + $0x8] sm:$0xff] (!%p443_p9)  ;;  %vm1114_vm8 = vcmask (!%p443_p9), 596992   ;;  %vm2930_vm10 = vmmov (!%p443_p9), 1  }
  0x1c   : > { %s3084_s28 = scalar_select %p500_p10, %s3037_s17, 1  ;;  %v3219_v56 = vand.u32 7, %v3214_v54  ;;  %v691_v57 = vadd.s32 128, %v3214_v54  ;;  %v3236_v0 = vand.u32 15, %v3214_v54  ;;  %v3239_v1 = vshra.s32 %v3214_v54, 4  ;;  %v1154_v11 = vld [vmem:[%s3975_s5 + $0x8] sm:$0xff] }
  0x1d   : > { %2483 = vmatpush3.bf16.msra.mxu1 %v2482_v3  ;;  %2472 = vmatpush1.bf16.msra.mxu0 %v2471_v18  ;;  %vm702_vm14 = vcmp.lt.s32.totalorder %v3214_v54, 68 }
  0x1e   : > { %s2212_s19 = sshll.u32 %s3084_s28, 3  ;;  %2474 = vmatprep.subr.bf16.mxu0 %v2473_v20  ;;  %s2304_s26 = sshll.u32 %s3084_s28, 4  ;;  %vm1026_vm9 = vcmp.ge.s32.totalorder %v3219_v56, 3  ;;  %v3225_v61 = vand.u32 15, %v691_v57  ;;  %v3227_v62 = vshra.s32 %v691_v57, 4  ;;  %vm696_vm15 = vcmp.ge.s32.totalorder %v3236_v0, 4 }
  0x1f   : > { %s3112_s21 = scalar_lea.vmem %s4015_s3, %s2212_s19  ;;  %s3126_s24 = scalar_lea.vmem %s3971_s1, %s2212_s19  ;;  %vm3244_vm11 = vmpackc.low %vm2930_vm10, %vm1026_vm9 }
  0x20   : > { %v3115_v19 = vld [vmem:[%s3112_s21] sm:$0xff]  ;;  %s3131_s3 = scalar_lea.vmem %s3972_s2, %s2212_s19  ;;  %s2903_s19 = smov 68   ;;  %vm697_vm12 = vcmp.ge.s32.totalorder %v3225_v61, 4  ;;  %vm706_vm13 = vcmp.ge.s32.totalorder %v3227_v62, 4 }
  0x21   : > { %2388 = vmatmul.mubr.msk.f32.vlgmr.msra.gmra.mrb[0].mxu1 %vm4000_vm1, %v3115_v19  ;;  %v519_v25 = vld [vmem:[%s3126_s24] sm:$0xff]  ;;  %2476 = vmatpush1.bf16.msra.mxu0 %v2475_v26  ;;  %s3989_s28 = smov 122  }
  0x22   : > { %1019 = vrot.lane.b32.xlu0 %v519_v25, %s2901_s15  ;;  %v520_v27 = vld [vmem:[%s3131_s3] sm:$0xff]  ;;  %2478 = vmatprep.subr.bf16.mxu0 %v2477_v28  ;;  %s3155_s15 = scalar_lea.vmem %s4016_s0, %s2304_s26  ;;  %s3990_s26 = smov 126  }
  0x23   : > { %v3158_v32 = vld [vmem:[%s3155_s15] sm:$0xff]  ;;  %v3161_v33 = vld [vmem:[%s3155_s15 + $0x8] sm:$0xff]  ;;  %2249 = vmatprep.mubr.msk.f32.mxu1 %vm4000_vm1, %v916_v46 }
  0x24   : > { %v2762_v34 = vpack.i.bf16 %v3161_v33, %v3158_v32 }
  0x25   : > { %2480 = vmatpush1.bf16.msra.mxu0 %v2479_v31 }
  0x26   : > { %1064 = vrot.lane.b32.xlu0 %v520_v27, %s2902_s25  ;;  %2538 = vmatprep.subr.bf16.mxu0 %v2898_v2  ;;  %s3994_s25 = smov 77  }
  0x28   : > { %2215 = vmatmul.mubr.msk.f32.vlgmr.msra.gmra.mrb[0].mxu0 %vm3996_vm2, %v519_v25  ;;  %vm734_vm2 = vcmp.lt.s32.totalorder %v3214_v54, 60 }
  0x2a   : > { %2763 = vrot.lane.b32.xlu0 %v2762_v34, %s2903_s19  ;;  %s2912_s19 = smov 92  }
  0x94   : > { %v1020_v35 = vpop.permute.xlu0 %1019 }
  0x95   : > { %v1023_v36 = vsel %vm1022_vm3, 0.0, %v1020_v35  ;;  %vm705_vm3 = vcmp.ge.s32.totalorder %v3239_v1, 4 }
  0x96   : > { %v3165_v37 = vsel %vm1024_vm4, %v1023_v36, 0.0  ;;  %vm719_vm4 = vcmp.lt.s32.totalorder %v3214_v54, 64 }
  0x97   : > { %1034 = vrot.lane.b32.xlu0 %v3165_v37, %s3989_s28  ;;  %s3993_s28 = smov 64  }
  0x98   : > { %v1065_v38 = vpop.permute.xlu0 %1064 }
  0x99   : > { %v1068_v39 = vsel %vm1067_vm5, 0.0, %v1065_v38  ;;  %vm708_vm5 = vmand %vm697_vm12, %vm706_vm13 }
  0x9a   : > { %v3173_v40 = vsel %vm1069_vm6, %v1068_v39, 0.0  ;;  %vm3999_vm6 = vcmask 719872   ;;  %vm3290_vm0 = vmpackc.low %vm706_vm13, %vm708_vm5  ;;  %vm4001_vm5 = vcmp.lt.s32.totalorder %v3236_v0, 12 }
  0x9b   : > { %2773 = vrot.lane.b32.xlu0 %v2762_v34, %s2905_s27  ;;  %s2913_s27 = smov 9   ;;  %2271 = vmatprep.mubr.msk.f32.mxu0 %vm3999_vm6, %v1154_v11 }
  0x9c   : > { %v2764_v47 = vpop.permute.xlu0 %2763 }
  0x9d   : > { %v2766_v5 = vunpack.i.h.bf16 %v2764_v47  ;;  %v2765_v8 = vunpack.i.l.bf16 %v2764_v47 }
  0x9f   : > { %1042 = vrot.lane.b32.xlu0 %v3165_v37, %s2906_s18  ;;  %s2914_s18 = smov 125   ;;  %v703_v12 = vsel %vm702_vm14, %v2765_v8, %v2766_v5  ;;  %v704_v15 = vsel %vm702_vm14, %v2766_v5, %v2765_v8  ;;  %vm729_vm14 = vcmp.lt.s32.totalorder %v3225_v61, 12 }
  0xa0   : > { %vm3329_vm1 = vmand %vm729_vm14, %vm706_vm13 }
  0xa3   : > { %2783 = vrot.lane.b32.xlu0 %v2762_v34, %s3995_s20 }
  0xa7   : > { %1060 = vrot.lane.b32.xlu0 %v3165_v37, %s3994_s25  ;;  %s2923_s25 = smov 112  }
  0xab   : > { %1099 = vrot.lane.b32.xlu0 %v3173_v40, %s3990_s26  ;;  %s2916_s26 = smov 104  }
  0xaf   : > { %1102 = vrot.lane.b32.xlu0 %v3173_v40, %s3992_s13  ;;  %s2920_s13 = smov 45  }
  0xb3   : > { %1087 = vrot.lane.b32.xlu0 %v3173_v40, %s2911_s22  ;;  %s2917_s22 = smov 4  }
  0xb7   : > { %1095 = vrot.lane.b32.xlu0 %v3173_v40, %s2912_s19  ;;  %s2918_s19 = smov 51  }
  0xf4   : > { %v685_v41 = vpop.f32.mrb[0].mxu1 }
  0xf5   : > { %1109 = vrot.lane.b32.xlu1 %v685_v41, %s2913_s27  ;;  %v2389_v42 = vpop.f32.mrb[1].mxu1  ;;  %s2919_s27 = smov 101  }
  0xf9   : > { %1054 = vrot.lane.b32.xlu1 %v3165_v37, %s2914_s18 }
  0xfb   : > { %v3184_v43 = vpop.f32.mrb[0].mxu0 }
  0xfc   : > { %v3186_v44 = vpop.f32.mrb[1].mxu0 }
  0xfd   : > { %2768 = vrot.lane.b32.xlu1 %v2762_v34, %s3993_s28  ;;  %v2787_v45 = vpack.i.bf16 %v3186_v44, %v3184_v43  ;;  %s2921_s28 = smov 80  }
  0xff   : > { %2788 = vrot.lane.b32.xlu0 %v2787_v45, %s2918_s19  ;;  %s2925_s19 = smov 94  }
 0x101   : > { %1038 = vrot.lane.b32.xlu1 %v3165_v37, %s2916_s26  ;;  %s2922_s26 = smov 74  }
 0x103   : > { %2798 = vrot.lane.b32.xlu0 %v2787_v45, %s2920_s13  ;;  %s2926_s13 = smov 48  }
 0x105   : > { %2778 = vrot.lane.b32.xlu1 %v2762_v34, %s2917_s22  ;;  %s2924_s22 = smov 96  }
 0x107   : > { %2808 = vrot.lane.b32.xlu0 %v2787_v45, %s2914_s18  ;;  %s2927_s18 = smov 3  }
 0x109   : > { %1057 = vrot.lane.b32.xlu1 %v3165_v37, %s2919_s27  ;;  %v3204_v48 = vpop.permute.xlu0 %1034 }
 0x10b   : > { %2818 = vrot.lane.b32.xlu0 %v2787_v45, %s2921_s28 }
 0x10d   : > { %1046 = vrot.lane.b32.xlu1 %v3165_v37, %s2921_s28  ;;  %s2928_s28 = smov 83   ;;  %v3206_v49 = vpop.permute.xlu0 %2773 }
 0x10e   : > { %v2776_v23 = vunpack.i.h.bf16 %v3206_v49  ;;  %v2775_v24 = vunpack.i.l.bf16 %v3206_v49 }
 0x110   : > { %v3345_v35 = vsel %vm734_vm2, %v2775_v24, %v2776_v23  ;;  %v3349_v36 = vsel %vm734_vm2, %v2776_v23, %v2775_v24  ;;  %vm3371_vm2 = vmpackc.low %vm697_vm12, %vm3329_vm1 }
 0x111   : > { %1050 = vrot.lane.b32.xlu1 %v3165_v37, %s2922_s26  ;;  %v3208_v50 = vpop.permute.xlu0 %1042  ;;  %s4004_s26 = smov 119   ;;  %vm3388_vm1 = vmpackc.low %vm729_vm14, %vm2930_vm10 }
 0x115   : > { %1079 = vrot.lane.b32.xlu1 %v3173_v40, %s3995_s20  ;;  %s4017_s20 = smov 77   ;;  %v3210_v51 = vpop.permute.xlu0 %2783 }
 0x116   : > { %v2786_v28 = vunpack.i.h.bf16 %v3210_v51  ;;  %v2785_v29 = vunpack.i.l.bf16 %v3210_v51  ;;  %v1505_v51 = vld [vmem:[%s3982_s12] sm:$0xff] }
 0x119   : > { %1083 = vrot.lane.b32.xlu1 %v3173_v40, %s2923_s25  ;;  %v3212_v52 = vpop.permute.xlu0 %1060 }
 0x11d   : > { %1091 = vrot.lane.b32.xlu1 %v3173_v40, %s2924_s22  ;;  %v3216_v55 = vpop.permute.xlu0 %1099  ;;  %s2929_s22 = smov 127  }
 0x121   : > { %1105 = vrot.lane.b32.xlu1 %v3173_v40, %s2925_s19  ;;  %v3222_v59 = vpop.permute.xlu0 %1102  ;;  %s4003_s19 = smov 118  }
 0x125   : > { %2793 = vrot.lane.b32.xlu1 %v2787_v45, %s2926_s13  ;;  %v3252_v9 = vpop.permute.xlu0 %1087  ;;  %s2932_s13 = smov 120  }
 0x129   : > { %2803 = vrot.lane.b32.xlu1 %v2787_v45, %s2927_s18  ;;  %v3306_v25 = vpop.permute.xlu0 %1095  ;;  %s2935_s18 = smov 5  }
 0x12d   : > { %2813 = vrot.lane.b32.xlu1 %v2787_v45, %s2928_s28  ;;  %s2934_s28 = smov 111  }
 0x131   : > { %2823 = vrot.lane.b32.xlu1 %v2787_v45, %s4017_s20  ;;  %s4018_s20 = smov 126  }
 0x167   : > { %v1110_v58 = vpop.permute.xlu1 %1109 }
 0x168   : > { %v1113_v60 = vsel %vm1112_vm7, 0.0, %v1110_v58  ;;  %vm1030_vm7 = vcmp.lt.s32.totalorder %v3219_v56, 5 }
 0x169   : > { %v3229_v63 = vsel %vm1114_vm8, %v1113_v60, 0.0  ;;  %vm3281_vm8 = vmand %vm696_vm15, %vm705_vm3 }
 0x16a   : > { %1124 = vrot.lane.b32.xlu1 %v3229_v63, %s4018_s20  ;;  %1144 = vrot.lane.b32.xlu0 %v3229_v63, %s2929_s22  ;;  %vm3317_vm6 = vmpackc.low %vm705_vm3, %vm3281_vm8 }
 0x16b   : > { %v1055_v3 = vpop.permute.xlu1 %1054  ;;  %vm3339_vm8 = vmand %vm4001_vm5, %vm705_vm3  ;;  %vm4002_vm3 = vcmp.ge.s32.totalorder %v3219_v56, 2 }
 0x16c   : > { %v2539_v7 = vpack.c.bf16 %v1055_v3, %v3165_v37  ;;  %vm3357_vm13 = vmpackc.low %vm1030_vm7, %vm2930_vm10 }
 0x16d   : > { %vm3380_vm5 = vmpackc.low %vm696_vm15, %vm3339_vm8 }
 0x16e   : > { %2541 = vmatpush1.bf16.msk.msra.mxu0 %vm3244_vm11, %v2539_v7  ;;  %1132 = vrot.lane.b32.xlu1 %v3229_v63, %s4003_s19  ;;  %vm3402_vm8 = vmpackc.low %vm4002_vm3, %vm1030_vm7  ;;  %s4070_s19 = smov 124  }
 0x16f   : > { %1128 = vrot.lane.b32.xlu0 %v3229_v63, %s2932_s13  ;;  %v2769_v10 = vpop.permute.xlu1 %2768  ;;  %2542 = vmatprep.subr.bf16.mxu0 %v2898_v2 }
 0x170   : > { %v2771_v13 = vunpack.i.h.bf16 %v2769_v10  ;;  %v2770_v14 = vunpack.i.l.bf16 %v2769_v10 }
 0x171   : > { %v2789_v47 = vpop.permute.xlu0 %2788 }
 0x172   : > { %v720_v17 = vsel %vm719_vm4, %v2770_v14, %v2771_v13  ;;  %v721_v18 = vsel %vm719_vm4, %v2771_v13, %v2770_v14  ;;  %1136 = vrot.lane.b32.xlu1 %v3229_v63, %s2923_s25  ;;  %vm2544_vm4 = vmpackc.low %vm1026_vm9, %vm1030_vm7  ;;  %vm762_vm9 = vcmp.lt.s32.totalorder %v3214_v54, 124  ;;  %s4029_s25 = smov 110   ;;  %v2791_v7 = vunpack.i.h.bf16 %v2789_v47 }
 0x173   : > { %v3295_v21 = vpack.c.bf16 %v720_v17, %v703_v12  ;;  %1147 = vrot.lane.b32.xlu0 %v3229_v63, %s4004_s26  ;;  %v1039_v22 = vpop.permute.xlu1 %1038  ;;  %v3308_v26 = vpack.c.bf16 %v721_v18, %v704_v15  ;;  %v764_v42 = vsel %vm762_vm9, %v2786_v28, %v2785_v29  ;;  %v763_v60 = vsel %vm762_vm9, %v2785_v29, %v2786_v28  ;;  %s4071_s26 = smov 122  }
 0x174   : > { %v2543_v27 = vpack.c.bf16 %v1039_v22, %v3204_v48  ;;  %v2496_v3 = vpack.c.bf16 %v764_v42, %v3161_v33  ;;  %v2790_v8 = vunpack.i.l.bf16 %v2789_v47  ;;  %vm4042_vm7 = vcmp.lt.s32.totalorder %v3236_v0, 12 }
 0x175   : > { %2486 = vmatprep.subr.msk.bf16.mxu1 %vm3290_vm0, %v3295_v21  ;;  %vm749_vm0 = vcmp.lt.s32.totalorder %v3214_v54, 4  ;;  %vm3420_vm3 = vmpackc.low %vm4042_vm7, %vm2930_vm10  ;;  %vm805_vm7 = vcmp.ge.s32.totalorder %v3227_v62, 3  ;;  %v2936_v15 = vmov 0   ;;  %v2799_v28 = vpop.permute.xlu0 %2798 }
 0x176   : > { %1140 = vrot.lane.b32.xlu1 %v3229_v63, %s4029_s25  ;;  %2545 = vmatpush1.bf16.msk.msra.mxu0 %vm2544_vm4, %v2543_v27  ;;  %vm772_vm4 = vcmp.lt.s32.totalorder %v3227_v62, 12  ;;  %v2801_v31 = vunpack.i.h.bf16 %v2799_v28 }
 0x177   : > { %1150 = vrot.lane.b32.xlu0 %v3229_v63, %s2934_s28  ;;  %v2779_v37 = vpop.permute.xlu1 %2778  ;;  %2546 = vmatprep.subr.bf16.mxu0 %v2898_v2  ;;  %s4073_s28 = smov 118  }
 0x178   : > { %v2781_v39 = vunpack.i.h.bf16 %v2779_v37  ;;  %v2780_v41 = vunpack.i.l.bf16 %v2779_v37  ;;  %2489 = vmatpush1.bf16.msk.msra.mxu1 %vm3317_vm6, %v3308_v26  ;;  %vm771_vm6 = vcmp.lt.s32.totalorder %v3239_v1, 12  ;;  %2827 = vset.pattern.permute.xlu1 %v2936_v15 }
 0x179   : > { %vm773_vm9 = vmand %vm696_vm15, %vm771_vm6  ;;  %2828 = vset.pattern.permute.xlu0 %v2936_v15 }
 0x17a   : > { %v750_v48 = vsel %vm749_vm0, %v2780_v41, %v2781_v39  ;;  %v751_v49 = vsel %vm749_vm0, %v2781_v39, %v2780_v41  ;;  %vm774_vm0 = vmand %vm697_vm12, %vm772_vm4  ;;  %vm801_vm12 = vcmp.lt.s32.totalorder %v3214_v54, 51 }
 0x17b   : > { %v2490_v53 = vpack.c.bf16 %v750_v48, %v3345_v35  ;;  %v2493_v57 = vpack.c.bf16 %v751_v49, %v3349_v36  ;;  %1257 = vrot.lane.b32.xlu0 %v3115_v19, %s2935_s18  ;;  %v1058_v58 = vpop.permute.xlu1 %1057  ;;  %vm3432_vm15 = vmpackc.low %vm772_vm4, %vm774_vm0  ;;  %v802_v13 = vsel %vm801_vm12, %v2790_v8, %v2791_v7  ;;  %vm804_vm0 = vcmp.ge.s32.totalorder %v3239_v1, 3 }
 0x17c   : > { %v2547_v19 = vpack.c.bf16 %v3208_v50, %v1058_v58  ;;  %v2499_v50 = vpack.c.bf16 %v763_v60, %v3158_v32  ;;  %v803_v18 = vsel %vm801_vm12, %v2791_v7, %v2790_v8  ;;  %v2508_v6 = vpack.c.bf16 %v802_v13, %v3349_v36 }
 0x17d   : > { %2492 = vmatprep.subr.msk.bf16.mxu1 %vm3371_vm2, %v2490_v53  ;;  %vm796_vm2 = vcmp.ge.s32.totalorder %v3225_v61, 3  ;;  %v2511_v22 = vpack.c.bf16 %v803_v18, %v3345_v35  ;;  %v1506_v53 = vld [vmem:[%s3982_s12 + $0x8] sm:$0xff] }
 0x17e   : > { %2549 = vmatpush1.bf16.msk.msra.mxu0 %vm3357_vm13, %v2547_v19  ;;  %2495 = vmatpush1.bf16.msk.msra.mxu1 %vm3380_vm5, %v2493_v57  ;;  %vm3443_vm13 = vmpackc.low %vm771_vm6, %vm773_vm9 }
 0x17f   : > { %v1047_v11 = vpop.permute.xlu1 %1046  ;;  %2550 = vmatprep.subr.bf16.mxu0 %v2898_v2  ;;  %2498 = vmatprep.subr.msk.bf16.mxu1 %vm3388_vm1, %v2496_v3  ;;  %vm3454_vm5 = vmand %vm729_vm14, %vm772_vm4  ;;  %vm795_vm1 = vcmp.ge.s32.totalorder %v3236_v0, 3  ;;  %vm4053_vm14 = vcmp.lt.s32.totalorder %v3236_v0, 12 }
 0x180   : > { %v2551_v12 = vpack.c.bf16 %v3212_v52, %v1047_v11  ;;  %vm3464_vm9 = vmand %vm796_vm2, %vm805_vm7 }
 0x181   : > { %vm3476_vm4 = vmand %vm4053_vm14, %vm771_vm6  ;;  %vm1075_vm6 = vcmp.lt.s32.totalorder %v3219_v56, 6  ;;  %vm828_vm14 = vcmp.lt.s32.totalorder %v3225_v61, 13 }
 0x182   : > { %2553 = vmatpush1.bf16.msk.msra.mxu0 %vm3244_vm11, %v2551_v12  ;;  %2501 = vmatpush1.bf16.msk.msra.mxu1 %vm3420_vm3, %v2499_v50  ;;  %vm806_vm11 = vmand %vm795_vm1, %vm804_vm0 }
 0x183   : > { %v1051_v17 = vpop.permute.xlu1 %1050  ;;  %2554 = vmatprep.subr.bf16.mxu0 %v2898_v2  ;;  %2504 = vmatprep.subr.msk.bf16.mxu1 %vm3432_vm15, %v3308_v26  ;;  %vm2509_vm3 = vmpackc.low %vm3464_vm9, %vm3454_vm5 }
 0x184   : > { %v2555_v20 = vpack.c.bf16 %v3173_v40, %v1051_v17  ;;  %vm2512_vm12 = vmpackc.low %vm806_vm11, %vm3476_vm4  ;;  %vm833_vm4 = vcmp.lt.s32.totalorder %v3214_v54, 45  ;;  %vm827_vm11 = vcmp.lt.s32.totalorder %v3236_v0, 13  ;;  %v915_v0 = vld [vmem:[%s3974_s4] sm:$0xff] }
 0x185   : > { %vm3509_vm15 = vmpackc.low %vm1075_vm6, %vm2930_vm10 }
 0x186   : > { %2557 = vmatpush1.bf16.msk.msra.mxu0 %vm3402_vm8, %v2555_v20  ;;  %2507 = vmatpush1.bf16.msk.msra.mxu1 %vm3443_vm13, %v3295_v21  ;;  %vm4058_vm8 = vcmp.ge.s32.totalorder %v3219_v56, 2 }
 0x187   : > { %v1080_v40 = vpop.permute.xlu1 %1079  ;;  %2510 = vmatprep.subr.msk.bf16.mxu1 %vm2509_vm3, %v2508_v6  ;;  %2558 = vmatprep.subr.bf16.mxu0 %v2898_v2  ;;  %vm2564_vm13 = vmpackc.low %vm2930_vm10, %vm4058_vm8  ;;  %vm818_vm3 = vcmp.lt.s32.totalorder %v3214_v54, 48 }
 0x188   : > { %v2559_v24 = vpack.c.bf16 %v1080_v40, %v3216_v55  ;;  %vm4059_vm5 = vmmov %vm4058_vm8 }
 0x189   : > { %vm2568_vm9 = vmpackc.low %vm4059_vm5, %vm1075_vm6 }
 0x18a   : > { %2513 = vmatpush1.bf16.msk.msra.mxu1 %vm2512_vm12, %v2511_v22  ;;  %2561 = vmatpush1.bf16.msk.msra.mxu0 %vm3509_vm15, %v2559_v24  ;;  %vm837_vm6 = vmand %vm828_vm14, %vm805_vm7  ;;  %v918_v22 = vld [vmem:[%s3974_s4 + $0x18] sm:$0xff] }
 0x18b   : > { %v1084_v21 = vpop.permute.xlu1 %1083  ;;  %2562 = vmatprep.subr.bf16.mxu0 %v2898_v2  ;;  %vm836_vm12 = vmand %vm827_vm11, %vm804_vm0 }
 0x18c   : > { %v2563_v26 = vpack.c.bf16 %v3222_v59, %v1084_v21  ;;  %v2800_v59 = vunpack.i.l.bf16 %v2799_v28  ;;  %vm2515_vm8 = vmpackc.low %vm837_vm6, %vm805_vm7  ;;  %vm861_vm7 = vcmp.lt.s32.totalorder %v3214_v54, 125 }
 0x18d   : > { %vm2518_vm5 = vmpackc.low %vm836_vm12, %vm804_vm0 }
 0x18e   : > { %2565 = vmatpush1.bf16.msk.msra.mxu0 %vm2564_vm13, %v2563_v26  ;;  %v834_v36 = vsel %vm833_vm4, %v2800_v59, %v2801_v31  ;;  %v835_v37 = vsel %vm833_vm4, %v2801_v31, %v2800_v59  ;;  %vm878_vm13 = vcmp.lt.s32.totalorder %v3227_v62, 13  ;;  %vm877_vm4 = vcmp.lt.s32.totalorder %v3239_v1, 13  ;;  %vm3562_vm0 = vmpackc.low %vm2930_vm10, %vm795_vm1  ;;  %v917_v62 = vld [vmem:[%s3974_s4 + $0x10] sm:$0xff] }
 0x18f   : > { %v1092_v27 = vpop.permute.xlu1 %1091  ;;  %2566 = vmatprep.subr.bf16.mxu0 %v2898_v2  ;;  %vm880_vm6 = vmand %vm796_vm2, %vm878_vm13 }
 0x190   : > { %v2567_v55 = vpack.c.bf16 %v1092_v27, %v3252_v9  ;;  %vm879_vm12 = vmand %vm795_vm1, %vm877_vm4 }
 0x191   : > { %vm2530_vm1 = vmpackc.low %vm879_vm12, %vm827_vm11  ;;  %vm1260_vm12 = vcmask 39936  }
 0x192   : > { %2569 = vmatpush1.bf16.msk.msra.mxu0 %vm2568_vm9, %v2567_v55  ;;  %vm3553_vm9 = vmpackc.low %vm2930_vm10, %vm796_vm2  ;;  %vm891_vm2 = vcmp.lt.s32.totalorder %v3214_v54, 80 }
 0x193   : > { %v1106_v29 = vpop.permute.xlu1 %1105  ;;  %2570 = vmatprep.subr.bf16.mxu0 %v2898_v2 }
 0x194   : > { %v2571_v30 = vpack.c.bf16 %v3306_v25, %v1106_v29  ;;  %v2809_v25 = vpop.permute.xlu0 %2808 }
 0x195   : > { %v2811_v46 = vunpack.i.h.bf16 %v2809_v25  ;;  %v2810_v47 = vunpack.i.l.bf16 %v2809_v25 }
 0x196   : > { %2573 = vmatpush1.bf16.msk.msra.mxu0 %vm3509_vm15, %v2571_v30  ;;  %vm848_vm15 = vcmp.lt.s32.totalorder %v3214_v54, 3 }
 0x197   : > { %v2794_v9 = vpop.permute.xlu1 %2793  ;;  %2574 = vmatprep.subr.bf16.mxu0 %v2898_v2  ;;  %v862_v7 = vsel %vm861_vm7, %v2810_v47, %v2811_v46  ;;  %v863_v8 = vsel %vm861_vm7, %v2811_v46, %v2810_v47  ;;  %v2274_v46 = vld [vmem:[%s3977_s7 + $0x28] sm:$0xff]  ;;  %v2298_v47 = vld [vmem:[%s3979_s9 + $0x18] sm:$0xff] }
 0x198   : > { %v2796_v34 = vunpack.i.h.bf16 %v2794_v9  ;;  %v2795_v35 = vunpack.i.l.bf16 %v2794_v9  ;;  %v2819_v57 = vpop.permute.xlu0 %2818  ;;  %v1153_v9 = vld [vmem:[%s3975_s5] sm:$0xff] }
 0x199   : > { %v2821_v10 = vunpack.i.h.bf16 %v2819_v57  ;;  %v2820_v11 = vunpack.i.l.bf16 %v2819_v57  ;;  %v1507_v57 = vld [vmem:[%s3982_s12 + $0x10] sm:$0xff] }
 0x19a   : > { %v819_v38 = vsel %vm818_vm3, %v2795_v35, %v2796_v34  ;;  %v820_v39 = vsel %vm818_vm3, %v2796_v34, %v2795_v35  ;;  %vm874_vm3 = vcmp.lt.s32.totalorder %v3214_v54, 83  ;;  %v1156_v35 = vld [vmem:[%s3975_s5 + $0x18] sm:$0xff] }
 0x19b   : > { %v2514_v41 = vpack.c.bf16 %v834_v36, %v819_v38  ;;  %v2517_v42 = vpack.c.bf16 %v835_v37, %v820_v39  ;;  %v2804_v45 = vpop.permute.xlu1 %2803  ;;  %v892_v16 = vsel %vm891_vm2, %v2820_v11, %v2821_v10  ;;  %v893_v17 = vsel %vm891_vm2, %v2821_v10, %v2820_v11  ;;  %v1155_v36 = vld [vmem:[%s3975_s5 + $0x10] sm:$0xff]  ;;  %v919_v37 = vld [vmem:[%s3977_s7] sm:$0xff]  ;;  %v920_v38 = vld [vmem:[%s3977_s7 + $0x8] sm:$0xff] }
 0x19c   : > { %v2806_v48 = vunpack.i.h.bf16 %v2804_v45  ;;  %v2805_v49 = vunpack.i.l.bf16 %v2804_v45  ;;  %vm1262_vm2 = vcmask 171008   ;;  %v2251_v39 = vld [vmem:[%s3977_s7 + $0x10] sm:$0xff]  ;;  %v1256_v10 = vand.u32 3, %v3214_v54 }
 0x19d   : > { %2516 = vmatprep.subr.msk.bf16.mxu1 %vm2515_vm8, %v2514_v41  ;;  %vm904_vm8 = vcmp.lt.s32.totalorder %v3214_v54, 77  ;;  %v2273_v41 = vld [vmem:[%s3977_s7 + $0x20] sm:$0xff]  ;;  %v2292_v45 = vld [vmem:[%s3979_s9 + $0x10] sm:$0xff] }
 0x19e   : > { %v849_v58 = vsel %vm848_vm15, %v2805_v49, %v2806_v48  ;;  %v850_v60 = vsel %vm848_vm15, %v2806_v48, %v2805_v49  ;;  %2519 = vmatpush1.bf16.msk.msra.mxu1 %vm2518_vm5, %v2517_v42  ;;  %vm3586_vm15 = vmpackc.low %vm880_vm6, %vm828_vm14  ;;  %v2252_v42 = vld [vmem:[%s3977_s7 + $0x18] sm:$0xff]  ;;  %v2290_v48 = vld [vmem:[%s3979_s9 + $0x8] sm:$0xff] }
 0x19f   : > { %v2520_v3 = vpack.c.bf16 %v3186_v44, %v849_v58  ;;  %v2523_v5 = vpack.c.bf16 %v3184_v43, %v850_v60  ;;  %v2814_v19 = vpop.permute.xlu1 %2813  ;;  %vm908_vm5 = vmand %vm828_vm14, %vm878_vm13  ;;  %v1595_v49 = vld [vmem:[%s3979_s9] sm:$0xff]  ;;  %v2646_v58 = vpack.c.bf16 %v1506_v53, %v1505_v51  ;;  %v1508_v60 = vld [vmem:[%s3982_s12 + $0x18] sm:$0xff] }
 0x1a0   : > { %v2816_v33 = vunpack.i.h.bf16 %v2814_v19  ;;  %v2815_v50 = vunpack.i.l.bf16 %v2814_v19  ;;  %vm2533_vm7 = vmpackc.low %vm908_vm5, %vm878_vm13  ;;  %vm1116_vm13 = vcmp.ge.s32.totalorder %v3219_v56, 1  ;;  %v1510_v19 = vld [vmem:[%s3982_s12 + $0x28] sm:$0xff] }
 0x1a1   : > { %2522 = vmatprep.subr.msk.bf16.mxu1 %vm3553_vm9, %v2520_v3  ;;  %vm907_vm9 = vmand %vm827_vm11, %vm877_vm4  ;;  %vm4066_vm11 = vcmask 130048   ;;  %v2650_v3 = vpack.c.bf16 %v1508_v60, %v1507_v57 }
 0x1a2   : > { %2525 = vmatpush1.bf16.msk.msra.mxu1 %vm3562_vm0, %v2523_v5  ;;  %v875_v44 = vsel %vm874_vm3, %v2815_v50, %v2816_v33  ;;  %v876_v32 = vsel %vm874_vm3, %v2816_v33, %v2815_v50  ;;  %vm2536_vm14 = vmpackc.low %vm907_vm9, %vm877_vm4  ;;  %vm1120_vm0 = vcmp.lt.s32.totalorder %v3219_v56, 7  ;;  %v1254_v56 = vld [vmem:[%s3976_s6] sm:$0xff]  ;;  %v1512_v33 = vld [vmem:[%s3982_s12 + $0x38] sm:$0xff]  ;;  %vm3738_vm9 = vcmp.lt.s32.totalorder %v1256_v10, 3 }
 0x1a3   : > { %v2526_v12 = vpack.c.bf16 %v876_v32, %v863_v8  ;;  %v2529_v13 = vpack.c.bf16 %v875_v44, %v862_v7  ;;  %v2824_v14 = vpop.permute.xlu1 %2823  ;;  %vm3625_vm4 = vmpackc.low %vm2930_vm10, %vm1116_vm13  ;;  %v1509_v5 = vld [vmem:[%s3982_s12 + $0x20] sm:$0xff]  ;;  %v1511_v8 = vld [vmem:[%s3982_s12 + $0x30] sm:$0xff] }
 0x1a4   : > { %v2826_v15 = vunpack.i.h.bf16 %v2824_v14  ;;  %v2825_v52 = vunpack.i.l.bf16 %v2824_v14  ;;  %vm2580_vm3 = vmpackc.low %vm1116_vm13, %vm1120_vm0  ;;  %v2654_v7 = vpack.c.bf16 %v1510_v19, %v1509_v5  ;;  %v2658_v50 = vpack.c.bf16 %v1512_v33, %v1511_v8  ;;  %v1408_v19 = vld [vmem:[%s3980_s10 + $0x50] sm:$0xff] }
 0x1a5   : > { %2528 = vmatprep.subr.msk.bf16.mxu1 %vm3586_vm15, %v2526_v12  ;;  %vm2584_vm6 = vmpackc.low %vm1120_vm0, %vm2930_vm10  ;;  %vm4069_vm15 = vcmask 719872  }
 0x1a6   : > { %v905_v18 = vsel %vm904_vm8, %v2825_v52, %v2826_v15  ;;  %v906_v6 = vsel %vm904_vm8, %v2826_v15, %v2825_v52  ;;  %2531 = vmatpush1.bf16.msk.msra.mxu1 %vm2530_vm1, %v2529_v13  ;;  %vm1314_vm1 = vcmask 588800   ;;  %vm1264_vm8 = vcmp.ge.s32.totalorder %v1256_v10, 1  ;;  %v1427_v10 = vld [vmem:[%s3980_s10 + $0xe8] sm:$0xff] }
 0x1a7   : > { %v2532_v61 = vpack.c.bf16 %v906_v6, %v893_v17  ;;  %v2535_v20 = vpack.c.bf16 %v905_v18, %v892_v16  ;;  %vm3733_vm5 = vmpackc.low %vm2930_vm10, %vm1264_vm8 }
 0x1a9   : > { %2534 = vmatprep.subr.msk.bf16.mxu1 %vm2533_vm7, %v2532_v61  ;;  %vm2597_vm7 = vmpackc.low %vm1264_vm8, %vm3738_vm9  ;;  %v1414_v61 = vld [vmem:[%s3980_s10 + $0x80] sm:$0xff] }
 0x1aa   : > { %2537 = vmatpush1.bf16.msk.msra.mxu1 %vm2536_vm14, %v2535_v20  ;;  %vm2603_vm14 = vmpackc.low %vm3738_vm9, %vm2930_vm10  ;;  %v1415_v20 = vld [vmem:[%s3980_s10 + $0x88] sm:$0xff]  ;;  %vm4078_vm10 = vmmov 0  }
 0x1ab   : > { %v2614_v40 = vpack.c.bf16 %v1415_v20, %v1414_v61  ;;  %v1412_v61 = vld [vmem:[%s3980_s10 + $0x70] sm:$0xff]  ;;  %v1413_v20 = vld [vmem:[%s3980_s10 + $0x78] sm:$0xff] }
 0x1ad   : > { %1002 = vmatmul.mubr.f32.vlgmr.msra.gmra.mrb[2].mxu1 %v915_v0  ;;  %v1398_v0 = vld [vmem:[%s3980_s10] sm:$0xff] }
 0x1ae   : > { %2250 = vmatprep.mubr.msk.f32.mxu1 %vm4066_vm11, %v918_v22  ;;  %v1399_v22 = vld [vmem:[%s3980_s10 + $0x8] sm:$0xff]  ;;  %vm4079_vm11 = vcmask 523264  }
 0x1af   : > { %vm4080_vm13 = vmmov %vm4079_vm11 }
 0x1b1   : > { %1008 = vmatmul.mubr.f32.gmra.mrb[4].mxu1 %v917_v62  ;;  %v1416_v62 = vld [vmem:[%s3980_s10 + $0x90] sm:$0xff] }
 0x1b2   : > { %2408 = vmatprep.mubr.msk.f32.mxu1 %vm1314_vm1, %v1254_v56  ;;  %v1422_v56 = vld [vmem:[%s3980_s10 + $0xc0] sm:$0xff] }
 0x1dc   : > { %v1145_v1 = vpop.permute.xlu0 %1144  ;;  %v1125_v23 = vpop.permute.xlu1 %1124 }
 0x1dd   : > { %v2575_v24 = vpack.c.bf16 %v1145_v1, %v3229_v63  ;;  %v1417_v1 = vld [vmem:[%s3980_s10 + $0x98] sm:$0xff] }
 0x1df   : > { %2577 = vmatpush1.bf16.msk.msra.mxu0 %vm3625_vm4, %v2575_v24  ;;  %v2616_v24 = vpack.c.bf16 %v1399_v22, %v1398_v0  ;;  %v2644_v0 = vpack.c.bf16 %v1413_v20, %v1412_v61 }
 0x1e0   : > { %2578 = vmatprep.subr.bf16.mxu0 %v2898_v2  ;;  %v1133_v27 = vpop.permute.xlu1 %1132 }
 0x1e1   : > { %v1129_v21 = vpop.permute.xlu0 %1128 }
 0x1e2   : > { %v2579_v26 = vpack.c.bf16 %v1129_v21, %v1125_v23  ;;  %v1255_v23 = vld [vmem:[%s3976_s6 + $0x8] sm:$0xff]  ;;  %v2618_v21 = vpack.c.bf16 %v1417_v1, %v1416_v62 }
 0x1e4   : > { %2581 = vmatpush1.bf16.msk.msra.mxu0 %vm2580_vm3, %v2579_v26  ;;  %v1137_v28 = vpop.permute.xlu1 %1136  ;;  %v1400_v26 = vld [vmem:[%s3980_s10 + $0x10] sm:$0xff] }
 0x1e5   : > { %v1148_v55 = vpop.permute.xlu0 %1147  ;;  %2582 = vmatprep.subr.bf16.mxu0 %v2898_v2 }
 0x1e6   : > { %v2583_v63 = vpack.c.bf16 %v1133_v27, %v1148_v55  ;;  %v1401_v27 = vld [vmem:[%s3980_s10 + $0x18] sm:$0xff]  ;;  %v1418_v55 = vld [vmem:[%s3980_s10 + $0xa0] sm:$0xff] }
 0x1e8   : > { %2585 = vmatpush1.bf16.msk.msra.mxu0 %vm2584_vm6, %v2583_v63  ;;  %v1141_v25 = vpop.permute.xlu1 %1140  ;;  %v1419_v63 = vld [vmem:[%s3980_s10 + $0xa8] sm:$0xff] }
 0x1e9   : > { %v1151_v29 = vpop.permute.xlu0 %1150  ;;  %2586 = vmatprep.subr.bf16.mxu0 %v2898_v2 }
 0x1ea   : > { %v2587_v30 = vpack.c.bf16 %v1151_v29, %v1137_v28  ;;  %v2620_v28 = vpack.c.bf16 %v1401_v27, %v1400_v26  ;;  %v2622_v29 = vpack.c.bf16 %v1419_v63, %v1418_v55 }
 0x1ec   : > { %2589 = vmatpush1.bf16.msk.msra.mxu0 %vm3625_vm4, %v2587_v30  ;;  %v1402_v30 = vld [vmem:[%s3980_s10 + $0x20] sm:$0xff]  ;;  %vm4081_vm4 = vcmask 130048  }
 0x1ed   : > { %v1258_v31 = vpop.permute.xlu0 %1257  ;;  %1229 = vmatprep.subr.mxu0 %v2900_v4 }
 0x1ee   : > { %v1261_v59 = vsel %vm1260_vm12, 0.0, %v1258_v31  ;;  %v1403_v31 = vld [vmem:[%s3980_s10 + $0x28] sm:$0xff] }
 0x1ef   : > { %v3647_v34 = vsel %vm1262_vm2, %v1261_v59, 0.0  ;;  %v1420_v59 = vld [vmem:[%s3980_s10 + $0xb0] sm:$0xff] }
 0x1f0   : > { %2270 = vmatpush1.msk.msra.mxu0 %vm1120_vm0, %v1141_v25  ;;  %1292 = vrot.lane.b32.xlu1 %v3647_v34, %s2929_s22  ;;  %s4072_s22 = smov 119   ;;  %v2624_v25 = vpack.c.bf16 %v1403_v31, %v1402_v30  ;;  %vm4082_vm0 = vmmov %vm4081_vm4 }
 0x1f1   : > { %1242 = vmatmul.mubr.f32.vlgmr.msra.gmra.mrb[2].mxu0 %v1153_v9  ;;  %1272 = vrot.lane.b32.xlu0 %v3647_v34, %s4018_s20  ;;  %s2937_s20 = smov 123   ;;  %v1421_v9 = vld [vmem:[%s3980_s10 + $0xb8] sm:$0xff]  ;;  %vm4083_vm3 = vmmov %vm4082_vm0 }
 0x1f2   : > { %2272 = vmatprep.mubr.msk.f32.mxu0 %vm4069_vm15, %v1156_v35  ;;  %2647 = vmatprep.subr.bf16.mxu0 %v2646_v58  ;;  %v1404_v35 = vld [vmem:[%s3980_s10 + $0x30] sm:$0xff]  ;;  %vm4084_vm6 = vmmov %vm4082_vm0 }
 0x1f3   : > { %2649 = vmatpush3.bf16.msra.mxu0 %v2646_v58  ;;  %vm4085_vm12 = vmmov %vm4082_vm0 }
 0x1f4   : > { %1276 = vrot.lane.b32.xlu1 %v3647_v34, %s4070_s19  ;;  %2651 = vmatprep.subr.bf16.mxu0 %v2650_v3  ;;  %vm4086_vm2 = vmmov %vm4082_vm0 }
 0x1f5   : > { %1247 = vmatmul.mubr.f32.gmra.mrb[4].mxu0 %v1155_v36  ;;  %1280 = vrot.lane.b32.xlu0 %v3647_v34, %s4071_s26  ;;  %v1405_v36 = vld [vmem:[%s3980_s10 + $0x38] sm:$0xff]  ;;  %s497_s26 = sand.u32 1, %s2888_s30   ;;  %vm4088_vm15 = vmmov %vm4079_vm11 }
 0x1f6   : > { %s3929_s18 = scalar_lea.sflag [#allocation3], %s497_s26 }
 0x1f7   : > { %2653 = vmatpush3.bf16.msra.mxu0 %v2650_v3 }
 0x1f8   : > { %1295 = vrot.lane.b32.xlu1 %v3647_v34, %s2937_s20  ;;  %2655 = vmatprep.subr.bf16.mxu0 %v2654_v7  ;;  %s2209_s20 = sshll.u32 %s497_s26, 5 }
 0x1f9   : > { %1284 = vrot.lane.b32.xlu0 %v3647_v34, %s2932_s13  ;;  %s3907_s0 = scalar_lea.vmem [#allocation2], %s2209_s20  ;;  %s4087_s13 = smov 64  }
 0x1fb   : > { %2657 = vmatpush3.bf16.msra.mxu0 %v2654_v7  ;;  %v1409_v7 = vld [vmem:[%s3980_s10 + $0x58] sm:$0xff] }
 0x1fc   : > { %1298 = vrot.lane.b32.xlu1 %v3647_v34, %s4072_s22  ;;  %2659 = vmatprep.subr.bf16.mxu0 %v2658_v50 }
 0x1fd   : > { %1288 = vrot.lane.b32.xlu0 %v3647_v34, %s4073_s28 }
 0x1ff   : > { %2661 = vmatpush3.bf16.msra.mxu0 %v2658_v50  ;;  %v1426_v50 = vld [vmem:[%s3980_s10 + $0xe0] sm:$0xff] }
 0x200   : > { %923 = vperm.xlu1 %2827, %v919_v37   ;;  %v1423_v37 = vld [vmem:[%s3980_s10 + $0xc8] sm:$0xff] }
 0x201   : > { %928 = vperm.xlu0 %2828, %v920_v38  }
 0x204   : > { %1162 = vperm.xlu1 %2827, %v2251_v39   ;;  %v2628_v39 = vpack.c.bf16 %v1405_v36, %v1404_v35 }
 0x205   : > { %1306 = vperm.xlu0 %2828, %v2273_v41  }
 0x208   : > { %1167 = vperm.xlu1 %2827, %v2252_v42   ;;  %v2630_v42 = vpack.c.bf16 %v1423_v37, %v1422_v56  ;;  %v2294_v37 = vld [vmem:[%s3978_s8 + $0x20] sm:$0xff] }
 0x209   : > { %1842 = vperm.xlu0 %2828, %v2292_v45   ;;  %v1406_v45 = vld [vmem:[%s3980_s10 + $0x40] sm:$0xff] }
 0x20c   : > { %1311 = vperm.xlu1 %2827, %v2274_v46   ;;  %v1407_v46 = vld [vmem:[%s3980_s10 + $0x48] sm:$0xff] }
 0x20d   : > { %2073 = vperm.xlu0 %2828, %v2298_v47   ;;  %v2632_v58 = vpack.c.bf16 %v1407_v46, %v1406_v45 }
 0x210   : > { %1831 = vperm.xlu1 %2827, %v2290_v48   ;;  %v1424_v48 = vld [vmem:[%s3980_s10 + $0xd0] sm:$0xff] }
 0x214   : > { %1598 = vperm.xlu1 %2827, %v1595_v49   ;;  %v1425_v49 = vld [vmem:[%s3980_s10 + $0xd8] sm:$0xff] }
 0x215   : > { %v2634_v5 = vpack.c.bf16 %v1425_v49, %v1424_v48  ;;  %v2287_v48 = vld [vmem:[%s3978_s8 + $0x10] sm:$0xff]  ;;  %v2286_v49 = vld [vmem:[%s3978_s8 + $0x8] sm:$0xff] }
 0x262   : > { %v1293_v11 = vpop.permute.xlu1 %1292 }
 0x263   : > { %v2590_v44 = vpack.c.bf16 %v1293_v11, %v3647_v34  ;;  %v1273_v32 = vpop.permute.xlu0 %1272  ;;  %v2626_v34 = vpack.c.bf16 %v1421_v9, %v1420_v59 }
 0x265   : > { %2592 = vmatprep.subr.msk.bf16.mxu1 %vm3733_vm5, %v2590_v44 }
 0x266   : > { %v1277_v13 = vpop.permute.xlu1 %1276  ;;  %2595 = vmatpush3.bf16.msk.msra.mxu1 %vm3733_vm5, %v2590_v44 }
 0x267   : > { %v2596_v54 = vpack.c.bf16 %v1277_v13, %v1273_v32  ;;  %v1281_v14 = vpop.permute.xlu0 %1280  ;;  %v2636_v32 = vpack.c.bf16 %v1409_v7, %v1408_v19  ;;  %v2638_v13 = vpack.c.bf16 %v1427_v10, %v1426_v50 }
 0x269   : > { %2598 = vmatprep.subr.msk.bf16.mxu1 %vm2597_vm7, %v2596_v54 }
 0x26a   : > { %v1296_v15 = vpop.permute.xlu1 %1295  ;;  %2601 = vmatpush3.bf16.msk.msra.mxu1 %vm2597_vm7, %v2596_v54  ;;  %v1410_v54 = vld [vmem:[%s3980_s10 + $0x60] sm:$0xff] }
 0x26b   : > { %v2602_v52 = vpack.c.bf16 %v1281_v14, %v1296_v15  ;;  %v1285_v16 = vpop.permute.xlu0 %1284  ;;  %v1411_v14 = vld [vmem:[%s3980_s10 + $0x68] sm:$0xff] }
 0x26d   : > { %2604 = vmatprep.subr.msk.bf16.mxu1 %vm2603_vm14, %v2602_v52 }
 0x26e   : > { %v1299_v17 = vpop.permute.xlu1 %1298  ;;  %2607 = vmatpush3.bf16.msk.msra.mxu1 %vm2603_vm14, %v2602_v52  ;;  %v1428_v52 = vld [vmem:[%s3980_s10 + $0xf0] sm:$0xff] }
 0x26f   : > { %v2608_v18 = vpack.c.bf16 %v1299_v17, %v1285_v16  ;;  %v1289_v6 = vpop.permute.xlu0 %1288  ;;  %v1429_v16 = vld [vmem:[%s3980_s10 + $0xf8] sm:$0xff] }
 0x271   : > { %2610 = vmatprep.subr.msk.bf16.mxu1 %vm3733_vm5, %v2608_v18 }
 0x272   : > { %2613 = vmatpush3.bf16.msk.msra.mxu1 %vm3733_vm5, %v2608_v18  ;;  %v2640_v18 = vpack.c.bf16 %v1411_v14, %v1410_v54  ;;  %v2831_v54 = vld [vmem:[%s3131_s3] sm:$0xff]  ;;  %s2107_s3 = sshll.u32 %s3907_s0, 4  ;;  %s3917_s3 = int_to_ptr.vmem [resolvable:$true] %s2107_s3 }
 0x273   : > { %2406 = vmatprep.subr.msk.mxu1 %vm3738_vm9, %v1289_v6  ;;  %s2834_s19 = scalar_lea.vmem %s3917_s3, 512 }
 0x274   : > { %p2835_p11 = scmp.ne.s32.totalorder %s3917_s3, %s2834_s19 }
 0x276   : > { %2407 = vmatpush3.msk.msra.mxu1 %vm3738_vm9, %v1289_v6  ;;  %v2642_v6 = vpack.c.bf16 %v1429_v16, %v1428_v52  ;;  %p2836_p12 = pnand %p2835_p11, %p3054_p5 }
 0x277   : > { %2409 = vmatmul.mubr.msk.f32.vlgmr.msra.gmra.mrb[6].mxu1 %vm1314_vm1, %v1255_v23  ;;  %2615 = vmatprep.subr.bf16.mxu1 %v2614_v40  ;;  %vm4089_vm1 = vmmov %vm4082_vm0 }
 0x278   : > { %2617 = vmatpush3.bf16.msra.mxu1 %v2616_v24  ;;  %p2837_p13 = pneg %p2836_p12 }
 0x279   : > { %2619 = vmatprep.subr.bf16.mxu1 %v2618_v21 }
 0x27c   : > { %2621 = vmatpush3.bf16.msra.mxu1 %v2620_v28  ;;  %v1594_v28 = vld [vmem:[%s3978_s8] sm:$0xff] }
 0x27d   : > { %2623 = vmatprep.subr.bf16.mxu1 %v2622_v29  ;;  %v2291_v29 = vld [vmem:[%s3978_s8 + $0x18] sm:$0xff] }
 0x27f   : > { %v924_v38 = vpop.permute.xlu1 %923 }
 0x280   : > { %2625 = vmatpush3.bf16.msra.mxu1 %v2624_v25  ;;  %v1003_v41 = vpop.f32.mrb[2].mxu1  ;;  %v929_v53 = vpop.permute.xlu0 %928 }
 0x281   : > { %2627 = vmatprep.subr.bf16.mxu1 %v2626_v34  ;;  %v1005_v47 = vpop.f32.mrb[3].mxu1  ;;  %v1004_v57 = vadd.f32 %v1003_v41, %v924_v38 }
 0x282   : > { %v1006_v51 = vadd.f32 %v1005_v47, %v924_v38 }
 0x283   : > { %v1014_v43 = vmax.f32 %v1004_v57, 0.0  ;;  %v1163_v22 = vpop.permute.xlu1 %1162 }
 0x284   : > { %2629 = vmatpush3.bf16.msra.mxu1 %v2628_v39  ;;  %v1015_v60 = vmax.f32 %v1006_v51, 0.0  ;;  %v1009_v3 = vpop.f32.mrb[4].mxu1  ;;  %v1307_v59 = vpop.permute.xlu0 %1306 }
 0x285   : > { %2631 = vmatprep.subr.bf16.mxu1 %v2630_v42  ;;  %v1010_v8 = vadd.f32 %v1009_v3, %v929_v53  ;;  %v1011_v33 = vpop.f32.mrb[5].mxu1 }
 0x286   : > { %v1012_v11 = vadd.f32 %v1011_v33, %v929_v53  ;;  %1494 = vmatprep.mubr.f32.mxu1 %v1015_v60 }
 0x287   : > { %v1016_v44 = vmax.f32 %v1010_v8, 0.0  ;;  %v1168_v24 = vpop.permute.xlu1 %1167 }
 0x288   : > { %2633 = vmatpush3.bf16.msra.mxu1 %v2632_v58  ;;  %v1017_v12 = vmax.f32 %v1012_v11, 0.0 }
 0x289   : > { %2635 = vmatprep.subr.bf16.mxu1 %v2634_v5  ;;  %v2664_v15 = vpack.c.bf16 %v1016_v44, %v1014_v43 }
 0x28a   : > { %v2662_v17 = vpack.c.bf16 %v1017_v12, %v1015_v60  ;;  %v1843_v60 = vpop.permute.xlu0 %1842 }
 0x28b   : > { %v1312_v30 = vpop.permute.xlu1 %1311 }
 0x28c   : > { %2637 = vmatpush3.bf16.msra.mxu1 %v2636_v32  ;;  %2663 = vmatprep.subr.bf16.mxu0 %v2662_v17 }
 0x28d   : > { %2639 = vmatprep.subr.bf16.mxu1 %v2638_v13 }
 0x28f   : > { %v1832_v51 = vpop.permute.xlu1 %1831 }
 0x290   : > { %2641 = vmatpush3.bf16.msra.mxu1 %v2640_v18 }
 0x291   : > { %2643 = vmatprep.subr.bf16.mxu1 %v2642_v6 }
 0x293   : > { %v1599_v3 = vpop.permute.xlu1 %1598 }
 0x294   : > { %2645 = vmatpush3.bf16.msra.mxu1 %v2644_v0  ;;  %v2074_v0 = vpop.permute.xlu0 %2073 }
 0x295   : > { %2672 = vmatprep.subr.bf16.mxu1 %v2898_v2 }
 0x297   : > { %1495 = vmatmul.mubr.f32.vlgmr.msra.gmra.mrb[8].mxu1 %v1014_v43 }
 0x298   : > { %1499 = vmatprep.mubr.f32.mxu1 %v1017_v12  ;;  %v2830_v12 = vld [vmem:[%s3155_s15 + $0x8] sm:$0xff] }
 0x29b   : > { %1500 = vmatmul.mubr.f32.gmra.mrb[10].mxu1 %v1016_v44  ;;  %v2829_v44 = vld [vmem:[%s3155_s15] sm:$0xff]  ;;  %s2305_s15 = sshll.u32 %s3037_s17, 9  ;;  %s2938_s17 = smov [#allocation2]  }
 0x29c   : > { %2448 = vmatprep.mubr.msk.f32.mxu1 %vm4078_vm10, %v2900_v4  ;;  %s3923_s28 = scalar_lea.hbm %s3984_s14, %s2305_s15  ;;  %s2838_s27 = sshll.u32 %s2938_s17, 4  ;;  %s2839_s27 = int_to_ptr.vmem [resolvable:$false] %s2838_s27 }
 0x29d   : > { %p2841_p0 = scmp.lt.s32.totalorder %s3917_s3, %s2839_s27 }
 0x2c4   : > { %v1243_v62 = vpop.f32.mrb[2].mxu0 }
 0x2c5   : > { %v1244_v1 = vadd.f32 %v1243_v62, %v1163_v22  ;;  %v1245_v40 = vpop.f32.mrb[3].mxu0  ;;  %v2832_v62 = vld [vmem:[%s3126_s24] sm:$0xff] }
 0x2c7   : > { %v1252_v23 = vmax.f32 %v1244_v1, 0.0 }
 0x2c8   : > { %v1248_v21 = vpop.f32.mrb[4].mxu0 }
 0x2c9   : > { %v1249_v26 = vadd.f32 %v1248_v21, %v1168_v24  ;;  %v1250_v27 = vpop.f32.mrb[5].mxu0  ;;  %2427 = vmatprep.mubr.msk.f32.mxu0 %vm4079_vm11, %v1252_v23 }
 0x2cb   : > { %v1253_v55 = vmax.f32 %v1249_v26, 0.0 }
 0x2cd   : > { %v2670_v63 = vpack.c.bf16 %v1253_v55, %v1252_v23  ;;  %2428 = vmatmul.mubr.msk.f32.vlgmr.msra.gmra.mrb[6].mxu0 %vm4080_vm13, %v1253_v55 }
 0x2ce   : > { %2665 = vmatpush1.bf16.msra.mxu0 %v2664_v15  ;;  %1668 = vmatprep.mubr.f32.mxu0 %v2900_v4 }
 0x2cf   : > { %2674 = vmatpush3.bf16.msra.mxu1 %v2670_v63  ;;  %2666 = vmatprep.subr.bf16.mxu0 %v2898_v2 }
 0x2d0   : > { %2678 = vmatprep.subr.bf16.mxu1 %v2898_v2 }
 0x2d1   : > { %2285 = vmatmul.mubr.msk.f32.vlgmr.msra.gmra.mrb[8].mxu0 %vm4081_vm4, %v1594_v28 }
 0x2d2   : > { %2449 = vmatmul.mubr.msk.f32.vlgmr.msra.gmra.mrb[12].mxu1 %vm4082_vm0, %v2291_v29  ;;  %2434 = vmatprep.mubr.msk.f32.mxu0 %vm4078_vm10, %v2900_v4 }
 0x2d3   : > { %2462 = vmatprep.mubr.msk.f32.mxu1 %vm4078_vm10, %v2900_v4 }
 0x34a   : > { %v2410_v31 = vpop.f32.mrb[6].mxu1 }
 0x34b   : > { %v1393_v9 = vadd.f32 %v2410_v31, %v1312_v30  ;;  %v1387_v25 = vpop.f32.mrb[7].mxu1 }
 0x34c   : > { %v1388_v34 = vadd.f32 %v1387_v25, %v1307_v59 }
 0x34d   : > { %v1397_v35 = vmax.f32 %v1393_v9, 0.0 }
 0x34e   : > { %v1396_v36 = vmax.f32 %v1388_v34, 0.0 }
 0x350   : > { %v2679_v56 = vpack.c.bf16 %v1397_v35, %v1396_v36 }
 0x352   : > { %2680 = vmatpush3.bf16.msra.mxu1 %v2679_v56 }
 0x355   : > { %2463 = vmatmul.mubr.msk.f32.vlgmr.msra.gmra.mrb[14].mxu1 %vm4083_vm3, %v2294_v37 }
 0x36a   : > { %v2352_v38 = vpop.f32.mrb[8].mxu1 }
 0x36b   : > { %v2353_v39 = vpop.f32.mrb[9].mxu1 }
 0x36c   : > { %v2354_v41 = vadd.f32 %v2353_v39, %v2352_v38 }
 0x36e   : > { %v2355_v42 = vpop.f32.mrb[10].mxu1 }
 0x36f   : > { %v2356_v45 = vpop.f32.mrb[11].mxu1 }
 0x370   : > { %v2357_v46 = vadd.f32 %v2356_v45, %v2355_v42 }
 0x372   : > { %v2667_v47 = vpack.c.bf16 %v2357_v46, %v2354_v41 }
 0x374   : > { %2668 = vmatpush3.bf16.msra.mxu0 %v2667_v47 }
 0x375   : > { %2669 = vmatprep.subr.bf16.mxu0 %v2898_v2 }
 0x377   : > { %2435 = vmatmul.mubr.msk.f32.vlgmr.msra.gmra.mrb[10].mxu0 %vm4084_vm6, %v2287_v48 }
 0x378   : > { %2671 = vmatpush3.bf16.msra.mxu0 %v2670_v63  ;;  %2441 = vmatprep.mubr.msk.f32.mxu0 %vm4078_vm10, %v2900_v4  ;;  %v2833_v63 = vld [vmem:[%s3112_s21] sm:$0xff]  ;;  %s2840_s21 = scalar_lea.vmem %s2839_s27, 1024 }
 0x379   : > { %2675 = vmatprep.subr.bf16.mxu0 %v2898_v2  ;;  %v2295_v2 = vld [vmem:[%s3978_s8 + $0x28] sm:$0xff]  ;;  %p2842_p1 = scmp.lt.s32.totalorder %s2840_s21, %s2834_s19 }
 0x37b   : > { %2442 = vmatmul.mubr.msk.f32.vlgmr.msra.gmra.mrb[12].mxu0 %vm4085_vm12, %v2286_v49  ;;  %p2843_p2 = por %p2842_p1, %p2841_p0 }
 0x37c   : > { %2455 = vmatprep.mubr.msk.f32.mxu0 %vm4078_vm10, %v2900_v4 }
 0x37d   : > { %p2844_p3 = pnand %p2843_p2, %p2837_p13 }
 0x3a0   : > { %v2429_v53 = vpop.f32.mrb[6].mxu0 }
 0x3a1   : > { %v1585_v57 = vpop.f32.mrb[7].mxu0 }
 0x3a2   : > { %v2676_v58 = vpack.c.bf16 %v2429_v53, %v1585_v57 }
 0x3a4   : > { %v1670_v5 = vpop.f32.mrb[8].mxu0  ;;  %2677 = vmatpush3.bf16.msra.mxu0 %v2676_v58 }
 0x3a5   : > { %v1671_v19 = vadd.f32 %v1670_v5, %v1599_v3  ;;  %v1672_v4 = vpop.f32.mrb[9].mxu0  ;;  %v1914_v7 = vpop.f32.mrb[12].mxu1 }
 0x3a6   : > { %v1673_v8 = vadd.f32 %v1672_v4, %v1599_v3  ;;  %v1915_v33 = vadd.f32 %v1914_v7, %v1843_v60  ;;  %v2450_v50 = vpop.f32.mrb[13].mxu1 }
 0x3a7   : > { %v1675_v10 = vmax.f32 %v1671_v19, 0.0  ;;  %2456 = vmatmul.mubr.msk.f32.vlgmr.msra.gmra.mrb[14].mxu0 %vm4086_vm2, %v2295_v2 }
 0x3a8   : > { %v1676_v11 = vmax.f32 %v1673_v8, 0.0  ;;  %v1918_v43 = vmax.f32 %v1915_v33, 0.0 }
 0x3a9   : > { %v2078_v32 = vadd.f32 %v2829_v44, %v1675_v10 }
 0x3aa   : > { %v2079_v13 = vadd.f32 %v2830_v12, %v1676_v11  ;;  %v2081_v14 = vadd.f32 %v2831_v54, %v1918_v43 }
 0x3ab   : > { %2089 = vst [vmem:[%s3907_s0] sm:$0xff] %v2078_v32 }
 0x3ac   : > { %2090 = vst [vmem:[%s3907_s0 + $0x8] sm:$0xff] %v2079_v13  ;;  %2084 = vrot.lane.b32.xlu0 %v2081_v14, %s4087_s13 }
 0x41e   : > { %v2085_v40 = vpop.permute.xlu0 %2084 }
 0x428   : > { %v2065_v15 = vpop.f32.mrb[14].mxu1 }
 0x429   : > { %v2464_v52 = vpop.f32.mrb[15].mxu1 }
 0x44a   : > { %v1750_v16 = vpop.f32.mrb[10].mxu0 }
 0x44b   : > { %v2436_v17 = vpop.f32.mrb[11].mxu0 }
 0x44e   : > { %v1823_v18 = vpop.f32.mrb[12].mxu0 }
 0x44f   : > { %v1824_v6 = vadd.f32 %v1823_v18, %v1750_v16  ;;  %v2443_v61 = vpop.f32.mrb[13].mxu0 }
 0x451   : > { %v1834_v20 = vadd.f32 %v1832_v51, %v1824_v6 }
 0x453   : > { %v1835_v22 = vmax.f32 %v1834_v20, 0.0 }
 0x455   : > { %v2080_v1 = vadd.f32 %v2832_v62, %v1835_v22 }
 0x457   : > { %v2087_v23 = vsel %vm4088_vm15, %v2080_v1, %v2085_v40 }
 0x458   : > { %2091 = vst [vmem:[%s3907_s0 + $0x10] sm:$0xff] %v2087_v23 }
 0x47a   : > { %v1992_v24 = vpop.f32.mrb[14].mxu0 }
 0x47b   : > { %v2066_v21 = vadd.f32 %v2065_v15, %v1992_v24  ;;  %v2457_v26 = vpop.f32.mrb[15].mxu0 }
 0x47d   : > { %v2076_v27 = vadd.f32 %v2074_v0, %v2066_v21 }
 0x47f   : > { %v2077_v55 = vmax.f32 %v2076_v27, 0.0 }
 0x481   : > { %v2082_v28 = vadd.f32 %v2833_v63, %v2077_v55 }
 0x483   : > { %v2088_v29 = vsel %vm4089_vm1, %v2082_v28, 0.0 }
 0x484   : > { %2092 = vst [vmem:[%s3907_s0 + $0x18] sm:$0xff] %v2088_v29 }
 0x485   : > { %2847 = shalt.err (!%p2844_p3)
}
 0x486   : > { %s2848_s26 = scalar_lea.hbm %s3923_s28, 512  ;;  %s2852_s0 = scalar_lea.hbm %s3984_s14, 1024 }
 0x487   : > { %p2849_p4 = scmp.ne.s32.totalorder %s3923_s28, %s2848_s26  ;;  %p2853_p9 = scmp.lt.u32.totalorder %s3923_s28, %s3984_s14 }
 0x488   : > { %p2854_p10 = scmp.lt.u32.totalorder %s2852_s0, %s2848_s26  ;;  %p2856_p12 = scmp.lt.u32.totalorder %s2848_s26, %s3923_s28 }
 0x489   : > { %p2850_p7 = pnand %p2849_p4, %p3054_p5 }
 0x48a   : > { %p2855_p11 = por %p2854_p10, %p2853_p9 }
 0x48b   : > { %p2851_p8 = pneg %p2850_p7 }
 0x48c   : > { %p2857_p13 = por %p2856_p12, %p2855_p11 }
 0x48e   : > { %p2858_p0 = pnand %p2857_p13, %p2851_p8 }
 0x490   : > { %2861 = shalt.err (!%p2858_p0)
}
 0x491   : > { %s2939_s24 = smov 256   ;;  %s2940_s22 = smov 16  }
 0x492   : > { %2681 = dma.vmem_to_hbm [thread:$0]  (%p3054_p5), %s3917_s3, 512, %s3923_s28, %s3929_s18, %s2939_s24, %s2939_s24, %s2940_s22  }
 0x493 PF: > { %p2687_p1 = scmp.ge.s32.totalorder %s2896_s16, 2  ;;  %s2122_s17 = sand.u32 1, %s2884_s29  }
 0x494   : > { %s2123_s27 = scalar_lea.sflag [#allocation3], %s2122_s17 }
 0x495   : > { %p2684_p2 = pnand %p2687_p1, %p3058_p6 }
 0x497   : > { %2879 = dma.done.wait (!%p2684_p2), %s2123_s27, 512  }
 0x498   : > { %2881 = vsyncadd (!%p2684_p2), %s2123_s27, 4294966784  ;;  %s4091_s16 = sld [smem:[#allocation6_spill]]  ;;  %s4092_s21 = sld [smem:[#allocation5_spill]] }
 0x499   : > { %s4093_s15 = sld [smem:[#allocation7_spill]]  ;;  %s4094_s29 = smov %s2888_s30 }
 0x49e   : > { %p24_p3 = scmp.ge.s32.totalorder %s4091_s16, 4   ;;  %s4095_s30 = smov %s4092_s21 }
 0x4a0   :  { %26 = sbr.rel (!%p24_p3) target bundleno = 7 (0x7), region = 130 }
 0x4a7   :  { %2128 = vsyncpa [#allocation3], 1 }
 0x4a8   :  { %2130 = vsyncpa [#allocation3 + $0x1], 1 }

</bundles_post_ra>
